<compile_context>
chip_gen: v5e
topology: v5e:2x2
jax: 0.10.0
libtpu: 0.0.40
codegen_flags: <defaults>
</compile_context>

<pallas_src>
import jax
import jax.numpy as jnp
from jax.experimental import pallas as pl
from jax.experimental.pallas import tpu as pltpu

H1 = 256   # padded width of the two 200-wide hidden layers
H2 = 128   # padded width of the 100-wide hidden layer


def _round_up(n, m):
    return ((n + m - 1) // m) * m


def _pad2(a, shape):
    return jnp.pad(a, [(0, shape[0] - a.shape[0]), (0, shape[1] - a.shape[1])])


def _vmem_capacity_bytes():
    try:
        return int(pltpu.get_tpu_info().vmem_capacity_bytes)
    except Exception:
        return 64 * 1024 * 1024        # conservative (v7x per-TensorCore) fallback


def deepecg_kernel(xt_ref, w1_ref, b1_ref, w2_ref, b2_ref,
                   w3_ref, b3_ref, w4_ref, o_ref):
    """Transposed MLP: activations are (H, tb); the batch lives on lanes."""
    # Layer 1: Linear(D, 200) + ReLU      (Dropout == identity at inference)
    h = jnp.dot(w1_ref[...], xt_ref[...], preferred_element_type=jnp.float32)
    h = jnp.maximum(h + b1_ref[...], 0.0)                     # (H1, tb) f32
    # Layer 2: Linear(200, 200) + ReLU    (Dropout == identity at inference)
    h = jnp.dot(w2_ref[...], h.astype(jnp.bfloat16),
                preferred_element_type=jnp.float32)
    h = jnp.maximum(h + b2_ref[...], 0.0)                     # (H1, tb)
    # Layer 3: Linear(200, 100) + ReLU
    h = jnp.dot(w3_ref[...], h.astype(jnp.bfloat16),
                preferred_element_type=jnp.float32)
    h = jnp.maximum(h + b3_ref[...], 0.0)                     # (H2, tb)
    # Layer 4: Linear(100, 1).  w4 is padded to 8 rows (rows 1..7 are zero) so
    # the matmul uses a clean M=8 MXU shape; the result is already lane-dense,
    # so no transpose/relayout is needed.  b4 is added in the wrapper.
    out8 = jnp.dot(w4_ref[...], h.astype(jnp.bfloat16),
                   preferred_element_type=jnp.float32)        # (8, tb)
    o_ref[...] = out8[0:1, :].astype(o_ref.dtype)             # (1, tb) lane-dense


def prepare_params(params):
    """One-time pad / transpose / bf16-cast of the logical weights into the
    kernel layout.  Call once and reuse across inference calls."""
    w1, b1, w2, b2, w3, b3, w4, b4 = params
    D = w1.shape[0]
    d_pad = _round_up(D, 128) if D >= 128 else _round_up(D, 8)
    w1t = _pad2(w1.T, (H1, d_pad)).astype(jnp.bfloat16)       # (H1, D_pad)
    b1c = _pad2(b1.reshape(-1, 1), (H1, 1)).astype(jnp.float32)
    w2t = _pad2(w2.T, (H1, H1)).astype(jnp.bfloat16)
    b2c = _pad2(b2.reshape(-1, 1), (H1, 1)).astype(jnp.float32)
    w3t = _pad2(w3.T, (H2, H1)).astype(jnp.bfloat16)
    b3c = _pad2(b3.reshape(-1, 1), (H2, 1)).astype(jnp.float32)
    w4t = _pad2(w4.T, (8, H2)).astype(jnp.bfloat16)           # (8, H2), rows 1..7 zero
    b4s = jnp.asarray(b4, jnp.float32).reshape(1, 1)
    return (w1t, b1c, w2t, b2c, w3t, b3c, w4t, b4s)


def _pick_batch_tile(b_pad128, d_pad, vmem_limit):
    """Largest 128-multiple batch tile that fits the VMEM budget, with >= 2
    grid steps when the batch allows it (megacore split on v7x)."""
    bytes_per_col = (2 * 2 * d_pad                 # bf16 x^T tile, double-buffered
                     + 4 * (H1 + H1 + H2)          # f32 activations
                     + 2 * (H1 + H1 + H2)          # bf16 copies fed to next matmul
                     + 2 * 4)                      # f32 output row, double-buffered
    w_bytes = (2 * (H1 * d_pad + H1 * H1 + H2 * H1 + 8 * H2)  # bf16 weights, 1 buffer
               + 4 * (H1 + H1 + H2))                          # f32 bias columns
    budget = vmem_limit - w_bytes - 6 * 1024 * 1024           # compiler-scratch headroom
    if budget < 128 * bytes_per_col:
        # TODO(synk): K-tile layer 1 (stream w1 in D-chunks) for very large input_dim.
        raise ValueError(
            f"input_dim too large: resident weights ({w_bytes} B) do not fit "
            f"under vmem_limit={vmem_limit} B; layer-1 K-tiling not implemented.")
    tb = min(4096, (budget // bytes_per_col) // 128 * 128)
    if b_pad128 >= 256:                            # keep >= 2 grid steps (2 TCs on v7x)
        tb = min(tb, (b_pad128 // 2) // 128 * 128)
    return max(128, min(tb, b_pad128))


def deepecg_forward(x, prepared, *, tb=None):
    """x: [B, input_dim] float32 -> [B, 1] float32.  `prepared` = prepare_params(...)."""
    w1t, b1c, w2t, b2c, w3t, b3c, w4t, b4s = prepared
    B, D = x.shape
    d_pad = w1t.shape[1]
    assert d_pad >= D, "prepared params do not match input_dim"

    # Generation-aware VMEM budget: ~96 MiB on v5e/v6e (128 MiB), ~40 MiB on v7x (64 MiB).
    vmem_cap = _vmem_capacity_bytes()
    vmem_limit = min(96 * 1024 * 1024,
                     max(32 * 1024 * 1024, vmem_cap - 24 * 1024 * 1024))

    b_pad128 = _round_up(B, 128)
    if tb is None:
        tb = _pick_batch_tile(b_pad128, d_pad, vmem_limit)
    b_pad = _round_up(B, tb)
    num_tiles = b_pad // tb

    # Pad + transpose x once (batch on the lane axis), cast to bf16 (MXU-native).
    xt = _pad2(x, (b_pad, d_pad)).T.astype(jnp.bfloat16)       # (D_pad, B_pad)

    def _const_spec(shape):
        # Resident weights/biases: constant index_map -> single buffer is enough.
        try:
            return pl.BlockSpec(shape, lambda i: (0, 0), pipeline_mode=pl.Buffered(1))
        except TypeError:
            return pl.BlockSpec(shape, lambda i: (0, 0))

    out = pl.pallas_call(
        deepecg_kernel,
        out_shape=jax.ShapeDtypeStruct((1, b_pad), jnp.float32),
        grid_spec=pltpu.PrefetchScalarGridSpec(
            num_scalar_prefetch=0,
            grid=(num_tiles,),
            in_specs=[
                pl.BlockSpec((d_pad, tb), lambda i: (0, i)),   # x^T tile (streamed)
                _const_spec((H1, d_pad)), _const_spec((H1, 1)),
                _const_spec((H1, H1)),    _const_spec((H1, 1)),
                _const_spec((H2, H1)),    _const_spec((H2, 1)),
                _const_spec((8, H2)),
            ],
            out_specs=pl.BlockSpec((1, tb), lambda i: (0, i)),  # lane-dense output slab
        ),
        compiler_params=pltpu.CompilerParams(
            dimension_semantics=("parallel",),
            vmem_limit_bytes=vmem_limit),
    )(xt, w1t, b1c, w2t, b2c, w3t, b3c, w4t)

    return out[0, :B][:, None] + b4s[0, 0]


def init_params(key, input_dim):
    """Deterministic init matching DeepECG.linears layer shapes.
    Weights stored as [in, out]; biases stored as [1, out]."""
    dims = [(input_dim, 200), (200, 200), (200, 100), (100, 1)]
    params = []
    for (fan_in, fan_out) in dims:
        key, kw, kb = jax.random.split(key, 3)
        bound = 1.0 / jnp.sqrt(fan_in)
        w = jax.random.uniform(kw, (fan_in, fan_out), jnp.float32, -bound, bound)
        b = jax.random.uniform(kb, (1, fan_out), jnp.float32, -bound, bound)
        params += [w, b]
    return tuple(params)


def reference_forward(x, params):
    w1, b1, w2, b2, w3, b3, w4, b4 = params
    h = jnp.maximum(x @ w1 + b1, 0.0)
    h = jnp.maximum(h @ w2 + b2, 0.0)
    h = jnp.maximum(h @ w3 + b3, 0.0)
    return h @ w4 + b4


if __name__ == "__main__":
    key = jax.random.PRNGKey(0)
    B, input_dim = 16, 32
    kx, kp = jax.random.split(key)
    x = jax.random.normal(kx, (B, input_dim), jnp.float32)
    params = init_params(kp, input_dim)

    prepared = prepare_params(params)          # one-time pad/transpose/cast
    fwd = jax.jit(deepecg_forward)
    out = jax.block_until_ready(fwd(x, prepared))

    ref = reference_forward(x, params)
    assert out.shape == (B, 1)
    # bf16 inputs with f32 accumulation -> slightly looser tolerance than pure f32
    assert jnp.allclose(out, ref, atol=2e-2, rtol=2e-2), (
        float(jnp.max(jnp.abs(out - ref))))

    print("KERNEL_OK")
</pallas_src>

<mosaic_0001>
module attributes {stable_mosaic.version = 11 : i64} {
  func.func @deepecg_kernel(%arg0: i32, %arg1: memref<32x128xbf16, #tpu.memory_space<vmem>>, %arg2: memref<256x32xbf16, #tpu.memory_space<vmem>>, %arg3: memref<256x1xf32, #tpu.memory_space<vmem>>, %arg4: memref<256x256xbf16, #tpu.memory_space<vmem>>, %arg5: memref<256x1xf32, #tpu.memory_space<vmem>>, %arg6: memref<128x256xbf16, #tpu.memory_space<vmem>>, %arg7: memref<128x1xf32, #tpu.memory_space<vmem>>, %arg8: memref<8x128xbf16, #tpu.memory_space<vmem>>, %arg9: memref<1x128xf32, #tpu.memory_space<vmem>>) attributes {dimension_semantics = [#tpu.dimension_semantics<parallel>], iteration_bounds = array<i64: 1>, scalar_prefetch = 0 : i64, scratch_operands = 0 : i64, tpu.core_type = #tpu.core_type<tc>, window_params = [{transform_indices = @transform_0, window_bounds = array<i64: 32, 128>}, {pipeline_mode = #tpu.pipeline_mode<synchronous>, transform_indices = @transform_1, window_bounds = array<i64: 256, 32>}, {pipeline_mode = #tpu.pipeline_mode<synchronous>, transform_indices = @transform_2, window_bounds = array<i64: 256, 1>}, {pipeline_mode = #tpu.pipeline_mode<synchronous>, transform_indices = @transform_3, window_bounds = array<i64: 256, 256>}, {pipeline_mode = #tpu.pipeline_mode<synchronous>, transform_indices = @transform_4, window_bounds = array<i64: 256, 1>}, {pipeline_mode = #tpu.pipeline_mode<synchronous>, transform_indices = @transform_5, window_bounds = array<i64: 128, 256>}, {pipeline_mode = #tpu.pipeline_mode<synchronous>, transform_indices = @transform_6, window_bounds = array<i64: 128, 1>}, {pipeline_mode = #tpu.pipeline_mode<synchronous>, transform_indices = @transform_7, window_bounds = array<i64: 8, 128>}, {transform_indices = @transform_8, window_bounds = array<i64: 1, 128>}]} {
    %c0 = arith.constant 0 : index
    %c0_0 = arith.constant 0 : index
    %0 = vector.load %arg2[%c0, %c0_0] : memref<256x32xbf16, #tpu.memory_space<vmem>>, vector<256x32xbf16>
    %c0_1 = arith.constant 0 : index
    %c0_2 = arith.constant 0 : index
    %1 = vector.load %arg1[%c0_1, %c0_2] : memref<32x128xbf16, #tpu.memory_space<vmem>>, vector<32x128xbf16>
    %cst = arith.constant dense<0.000000e+00> : vector<256x128xf32>
    %2 = tpu.matmul %0, %1, %cst {dimension_numbers = #tpu.dot_dimension_numbers<[1], [0], [0], [1], [0, 0, 1, 1], [], []>} : vector<256x32xbf16>, vector<32x128xbf16>, vector<256x128xf32> -> vector<256x128xf32>
    %c0_3 = arith.constant 0 : index
    %c0_4 = arith.constant 0 : index
    %3 = vector.load %arg3[%c0_3, %c0_4] : memref<256x1xf32, #tpu.memory_space<vmem>>, vector<256x1xf32>
    %4 = vector.broadcast %3 : vector<256x1xf32> to vector<256x128xf32>
    %5 = arith.addf %2, %4 : vector<256x128xf32>
    %cst_5 = arith.constant 0.000000e+00 : f32
    %6 = vector.broadcast %cst_5 : f32 to vector<256x128xf32>
    %7 = arith.maximumf %5, %6 : vector<256x128xf32>
    %c0_6 = arith.constant 0 : index
    %c0_7 = arith.constant 0 : index
    %8 = vector.load %arg4[%c0_6, %c0_7] : memref<256x256xbf16, #tpu.memory_space<vmem>>, vector<256x256xbf16>
    %9 = arith.truncf %7 : vector<256x128xf32> to vector<256x128xbf16>
    %cst_8 = arith.constant dense<0.000000e+00> : vector<256x128xf32>
    %10 = tpu.matmul %8, %9, %cst_8 {dimension_numbers = #tpu.dot_dimension_numbers<[1], [0], [0], [1], [0, 0, 1, 1], [], []>} : vector<256x256xbf16>, vector<256x128xbf16>, vector<256x128xf32> -> vector<256x128xf32>
    %c0_9 = arith.constant 0 : index
    %c0_10 = arith.constant 0 : index
    %11 = vector.load %arg5[%c0_9, %c0_10] : memref<256x1xf32, #tpu.memory_space<vmem>>, vector<256x1xf32>
    %12 = vector.broadcast %11 : vector<256x1xf32> to vector<256x128xf32>
    %13 = arith.addf %10, %12 : vector<256x128xf32>
    %cst_11 = arith.constant 0.000000e+00 : f32
    %14 = vector.broadcast %cst_11 : f32 to vector<256x128xf32>
    %15 = arith.maximumf %13, %14 : vector<256x128xf32>
    %c0_12 = arith.constant 0 : index
    %c0_13 = arith.constant 0 : index
    %16 = vector.load %arg6[%c0_12, %c0_13] : memref<128x256xbf16, #tpu.memory_space<vmem>>, vector<128x256xbf16>
    %17 = arith.truncf %15 : vector<256x128xf32> to vector<256x128xbf16>
    %cst_14 = arith.constant dense<0.000000e+00> : vector<128x128xf32>
    %18 = tpu.matmul %16, %17, %cst_14 {dimension_numbers = #tpu.dot_dimension_numbers<[1], [0], [0], [1], [0, 0, 1, 1], [], []>} : vector<128x256xbf16>, vector<256x128xbf16>, vector<128x128xf32> -> vector<128x128xf32>
    %c0_15 = arith.constant 0 : index
    %c0_16 = arith.constant 0 : index
    %19 = vector.load %arg7[%c0_15, %c0_16] : memref<128x1xf32, #tpu.memory_space<vmem>>, vector<128x1xf32>
    %20 = vector.broadcast %19 : vector<128x1xf32> to vector<128x128xf32>
    %21 = arith.addf %18, %20 : vector<128x128xf32>
    %cst_17 = arith.constant 0.000000e+00 : f32
    %22 = vector.broadcast %cst_17 : f32 to vector<128x128xf32>
    %23 = arith.maximumf %21, %22 : vector<128x128xf32>
    %c0_18 = arith.constant 0 : index
    %c0_19 = arith.constant 0 : index
    %24 = vector.load %arg8[%c0_18, %c0_19] : memref<8x128xbf16, #tpu.memory_space<vmem>>, vector<8x128xbf16>
    %25 = arith.truncf %23 : vector<128x128xf32> to vector<128x128xbf16>
    %cst_20 = arith.constant dense<0.000000e+00> : vector<8x128xf32>
    %26 = tpu.matmul %24, %25, %cst_20 {dimension_numbers = #tpu.dot_dimension_numbers<[1], [0], [0], [1], [0, 0, 1, 1], [], []>} : vector<8x128xbf16>, vector<128x128xbf16>, vector<8x128xf32> -> vector<8x128xf32>
    %27 = vector.extract_strided_slice %26 {offsets = [0, 0], sizes = [1, 128], strides = [1, 1]} : vector<8x128xf32> to vector<1x128xf32>
    %c0_21 = arith.constant 0 : index
    %c0_22 = arith.constant 0 : index
    %28 = vector.load %arg9[%c0_21, %c0_22] : memref<1x128xf32, #tpu.memory_space<vmem>>, vector<1x128xf32>
    tpu.vector_store %arg9[%c0_21, %c0_22], %27 {strides = array<i32>} : memref<1x128xf32, #tpu.memory_space<vmem>>, vector<1x128xf32>,
    return
  }
  func.func @transform_0(%arg0: i32) -> (i32, i32) {
    %c0_i32 = arith.constant 0 : i32
    %c0_i32_0 = arith.constant 0 : i32
    return %c0_i32, %arg0 : i32, i32
  }
  func.func @transform_1(%arg0: i32) -> (i32, i32) {
    %c0_i32 = arith.constant 0 : i32
    %c0_i32_0 = arith.constant 0 : i32
    %c0_i32_1 = arith.constant 0 : i32
    return %c0_i32, %c0_i32_0 : i32, i32
  }
  func.func @transform_2(%arg0: i32) -> (i32, i32) {
    %c0_i32 = arith.constant 0 : i32
    %c0_i32_0 = arith.constant 0 : i32
    %c0_i32_1 = arith.constant 0 : i32
    return %c0_i32, %c0_i32_0 : i32, i32
  }
  func.func @transform_3(%arg0: i32) -> (i32, i32) {
    %c0_i32 = arith.constant 0 : i32
    %c0_i32_0 = arith.constant 0 : i32
    %c0_i32_1 = arith.constant 0 : i32
    return %c0_i32, %c0_i32_0 : i32, i32
  }
  func.func @transform_4(%arg0: i32) -> (i32, i32) {
    %c0_i32 = arith.constant 0 : i32
    %c0_i32_0 = arith.constant 0 : i32
    %c0_i32_1 = arith.constant 0 : i32
    return %c0_i32, %c0_i32_0 : i32, i32
  }
  func.func @transform_5(%arg0: i32) -> (i32, i32) {
    %c0_i32 = arith.constant 0 : i32
    %c0_i32_0 = arith.constant 0 : i32
    %c0_i32_1 = arith.constant 0 : i32
    return %c0_i32, %c0_i32_0 : i32, i32
  }
  func.func @transform_6(%arg0: i32) -> (i32, i32) {
    %c0_i32 = arith.constant 0 : i32
    %c0_i32_0 = arith.constant 0 : i32
    %c0_i32_1 = arith.constant 0 : i32
    return %c0_i32, %c0_i32_0 : i32, i32
  }
  func.func @transform_7(%arg0: i32) -> (i32, i32) {
    %c0_i32 = arith.constant 0 : i32
    %c0_i32_0 = arith.constant 0 : i32
    %c0_i32_1 = arith.constant 0 : i32
    return %c0_i32, %c0_i32_0 : i32, i32
  }
  func.func @transform_8(%arg0: i32) -> (i32, i32) {
    %c0_i32 = arith.constant 0 : i32
    %c0_i32_0 = arith.constant 0 : i32
    return %c0_i32, %arg0 : i32, i32
  }
}

</mosaic_0001>

<bundles_post_ra>
// kernel: deepecg_forward.1
= control target key start
LH: loop header
LB: loop body
LE: loop exit
PB: predicated region body
PF: predicated region fallthrough
CT: control target
= control target key end

     0   :  { %v1829_v0 = vmov 0   ;;  %vm350_vm0 = vcmask 261120   ;;  %s2740_s2 = inlined_call_operand.vmem [shape: f32[256,1], index: 2, kind: input, shape index: {}]   ;;  %s2741_s0 = inlined_call_operand.vmem [shape: bf16[32,128], index: 0, kind: input, shape index: {}]   ;;  %s2742_s1 = inlined_call_operand.vmem [shape: bf16[256,32], index: 1, kind: input, shape index: {}]   ;;  %s2743_s4 = inlined_call_operand.vmem [shape: f32[256,1], index: 4, kind: input, shape index: {}]   ;;  %s2744_s6 = inlined_call_operand.vmem [shape: f32[128,1], index: 6, kind: input, shape index: {}]   ;;  %s2745_s3 = inlined_call_operand.vmem [shape: bf16[256,256], index: 3, kind: input, shape index: {}]   ;;  %s2746_s5 = inlined_call_operand.vmem [shape: bf16[128,256], index: 5, kind: input, shape index: {}]   ;;  %s2747_s7 = inlined_call_operand.vmem [shape: bf16[8,128], index: 7, kind: input, shape index: {}]   ;;  %s2748_s8 = inlined_call_operand.vmem [shape: f32[1,128], index: 8, kind: output, shape index: {}]  }
   0x1   :  { %1828 = vset.pattern.permute.xlu2 %v1829_v0  ;;  %1827 = vset.pattern.permute.xlu1 %v1829_v0  ;;  %v96_v1 = vld [vmem:[%s2740_s2 + $0xf0] sm:$0xff]  ;;  %v94_v2 = vld [vmem:[%s2740_s2 + $0xe0] sm:$0xff]  ;;  %v1776_v4 = vld [vmem:[%s2741_s0 + $0x8] sm:$0xff] }
   0x2   :  { %v80_v3 = vld [vmem:[%s2740_s2 + $0x70] sm:$0xff]  ;;  %1826 = vset.pattern.permute.xlu0 %v1829_v0  ;;  %240 = vperm.xlu2 %1828, %v94_v2   ;;  %v1775_v5 = vld [vmem:[%s2741_s0] sm:$0xff]  ;;  %v95_v6 = vld [vmem:[%s2740_s2 + $0xe8] sm:$0xff] }
   0x3   :  { %250 = vperm.xlu0 %1826, %v96_v1   ;;  %170 = vperm.xlu1 %1827, %v80_v3   ;;  %v97_v7 = vld [vmem:[%s2740_s2 + $0xf8] sm:$0xff]  ;;  %v1759_v9 = vld [vmem:[%s2742_s1] sm:$0xff]  ;;  %v92_v10 = vld [vmem:[%s2740_s2 + $0xd0] sm:$0xff] }
   0x4   :  { %405 = vmatpush.bf16.msra.mxu0 %v1776_v4  ;;  %v81_v8 = vld [vmem:[%s2740_s2 + $0x78] sm:$0xff]  ;;  %v79_v11 = vld [vmem:[%s2740_s2 + $0x68] sm:$0xff]  ;;  %v78_v12 = vld [vmem:[%s2740_s2 + $0x60] sm:$0xff] }
   0x5   :  { %v77_v13 = vld [vmem:[%s2740_s2 + $0x58] sm:$0xff]  ;;  %v76_v15 = vld [vmem:[%s2740_s2 + $0x50] sm:$0xff]  ;;  %v1760_v16 = vld [vmem:[%s2742_s1 + $0x8] sm:$0xff] }
   0x6   :  { %v93_v14 = vld [vmem:[%s2740_s2 + $0xd8] sm:$0xff]  ;;  %v74_v17 = vld [vmem:[%s2740_s2 + $0x40] sm:$0xff]  ;;  %v91_v19 = vld [vmem:[%s2740_s2 + $0xc8] sm:$0xff] }
   0x7   :  { %v90_v18 = vld [vmem:[%s2740_s2 + $0xc0] sm:$0xff]  ;;  %v89_v20 = vld [vmem:[%s2740_s2 + $0xb8] sm:$0xff]  ;;  %v88_v21 = vld [vmem:[%s2740_s2 + $0xb0] sm:$0xff] }
   0x8   :  { %406 = vmatpush.bf16.msra.mxu0 %v1775_v5  ;;  %v75_v22 = vld [vmem:[%s2740_s2 + $0x48] sm:$0xff]  ;;  %v1761_v23 = vld [vmem:[%s2742_s1 + $0x10] sm:$0xff]  ;;  %v86_v24 = vld [vmem:[%s2740_s2 + $0xa0] sm:$0xff] }
   0x9   :  { %v73_v25 = vld [vmem:[%s2740_s2 + $0x38] sm:$0xff]  ;;  %v72_v26 = vld [vmem:[%s2740_s2 + $0x30] sm:$0xff]  ;;  %v71_v27 = vld [vmem:[%s2740_s2 + $0x28] sm:$0xff] }
   0xa   :  { %245 = vperm.xlu2 %1828, %v95_v6   ;;  %v87_v28 = vld [vmem:[%s2740_s2 + $0xa8] sm:$0xff]  ;;  %v70_v29 = vld [vmem:[%s2740_s2 + $0x20] sm:$0xff]  ;;  %v1762_v30 = vld [vmem:[%s2742_s1 + $0x18] sm:$0xff] }
   0xb   :  { %255 = vperm.xlu0 %1826, %v97_v7   ;;  %175 = vperm.xlu1 %1827, %v81_v8   ;;  %v68_v31 = vld [vmem:[%s2740_s2 + $0x10] sm:$0xff]  ;;  %v85_v33 = vld [vmem:[%s2740_s2 + $0x98] sm:$0xff]  ;;  %v82_v34 = vld [vmem:[%s2740_s2 + $0x80] sm:$0xff] }
   0xc   :  { %1551 = vmatmul.msk.bf16.vlgmr.msra.gmra.mxu0 %vm350_vm0, %v1759_v9  ;;  %v84_v32 = vld [vmem:[%s2740_s2 + $0x90] sm:$0xff]  ;;  %v69_v35 = vld [vmem:[%s2740_s2 + $0x18] sm:$0xff]  ;;  %v1763_v36 = vld [vmem:[%s2742_s1 + $0x20] sm:$0xff] }
   0xd   :  { %v67_v37 = vld [vmem:[%s2740_s2 + $0x8] sm:$0xff]  ;;  %v66_v38 = vld [vmem:[%s2740_s2] sm:$0xff]  ;;  %v583_v42 = vld [vmem:[%s2743_s4 + $0x78] sm:$0xff] }
   0xe   :  { %v83_v39 = vld [vmem:[%s2740_s2 + $0x88] sm:$0xff]  ;;  %v580_v41 = vld [vmem:[%s2743_s4 + $0x60] sm:$0xff]  ;;  %v582_v43 = vld [vmem:[%s2743_s4 + $0x70] sm:$0xff] }
   0xf   :  { %v1764_v40 = vld [vmem:[%s2742_s1 + $0x28] sm:$0xff]  ;;  %v579_v44 = vld [vmem:[%s2743_s4 + $0x58] sm:$0xff]  ;;  %v578_v45 = vld [vmem:[%s2743_s4 + $0x50] sm:$0xff] }
  0x10   :  { %v1765_v47 = vld [vmem:[%s2742_s1 + $0x30] sm:$0xff]  ;;  %v577_v49 = vld [vmem:[%s2743_s4 + $0x48] sm:$0xff]  ;;  %v572_v52 = vld [vmem:[%s2743_s4 + $0x20] sm:$0xff] }
  0x11   :  { %v574_v48 = vld [vmem:[%s2743_s4 + $0x30] sm:$0xff]  ;;  %v581_v50 = vld [vmem:[%s2743_s4 + $0x68] sm:$0xff]  ;;  %v576_v53 = vld [vmem:[%s2743_s4 + $0x40] sm:$0xff] }
  0x12   :  { %230 = vperm.xlu2 %1828, %v92_v10   ;;  %v573_v51 = vld [vmem:[%s2743_s4 + $0x28] sm:$0xff]  ;;  %v1766_v57 = vld [vmem:[%s2742_s1 + $0x38] sm:$0xff]  ;;  %v568_v58 = vld [vmem:[%s2743_s4] sm:$0xff] }
  0x13   :  { %165 = vperm.xlu1 %1827, %v79_v11   ;;  %160 = vperm.xlu0 %1826, %v78_v12   ;;  %v571_v59 = vld [vmem:[%s2743_s4 + $0x18] sm:$0xff]  ;;  %v598_v1 = vld [vmem:[%s2743_s4 + $0xf0] sm:$0xff]  ;;  %v1767_v6 = vld [vmem:[%s2742_s1 + $0x40] sm:$0xff] }
  0x14   :  { %v575_v60 = vld [vmem:[%s2743_s4 + $0x38] sm:$0xff]  ;;  %v570_v2 = vld [vmem:[%s2743_s4 + $0x10] sm:$0xff]  ;;  %v597_v8 = vld [vmem:[%s2743_s4 + $0xe8] sm:$0xff] }
  0x15   :  { %v599_v0 = vld [vmem:[%s2743_s4 + $0xf8] sm:$0xff]  ;;  %v594_v7 = vld [vmem:[%s2743_s4 + $0xd0] sm:$0xff]  ;;  %v569_v10 = vld [vmem:[%s2743_s4 + $0x8] sm:$0xff] }
  0x1a   :  { %155 = vperm.xlu2 %1828, %v77_v13  }
  0x1b   :  { %235 = vperm.xlu0 %1826, %v93_v14   ;;  %150 = vperm.xlu1 %1827, %v76_v15   ;;  %v593_v14 = vld [vmem:[%s2743_s4 + $0xc8] sm:$0xff]  ;;  %v592_v15 = vld [vmem:[%s2743_s4 + $0xc0] sm:$0xff] }
  0x1c   :  { %1552 = vmatmul.msk.bf16.gmra.mxu0 %vm350_vm0, %v1760_v16 }
  0x22   :  { %140 = vperm.xlu2 %1828, %v74_v17   ;;  %v596_v17 = vld [vmem:[%s2743_s4 + $0xe0] sm:$0xff] }
  0x23   :  { %220 = vperm.xlu0 %1826, %v90_v18   ;;  %225 = vperm.xlu1 %1827, %v91_v19  }
  0x2a   :  { %215 = vperm.xlu2 %1828, %v89_v20   ;;  %v1768_v20 = vld [vmem:[%s2742_s1 + $0x48] sm:$0xff] }
  0x2b   :  { %210 = vperm.xlu1 %1827, %v88_v21   ;;  %145 = vperm.xlu0 %1826, %v75_v22   ;;  %v588_v21 = vld [vmem:[%s2743_s4 + $0xa0] sm:$0xff]  ;;  %v591_v22 = vld [vmem:[%s2743_s4 + $0xb8] sm:$0xff] }
  0x2c   :  { %1553 = vmatmul.msk.bf16.gmra.mxu0 %vm350_vm0, %v1761_v23 }
  0x32   :  { %200 = vperm.xlu2 %1828, %v86_v24  }
  0x33   :  { %135 = vperm.xlu1 %1827, %v73_v25   ;;  %130 = vperm.xlu0 %1826, %v72_v26   ;;  %v595_v25 = vld [vmem:[%s2743_s4 + $0xd8] sm:$0xff] }
  0x3a   :  { %125 = vperm.xlu2 %1828, %v71_v27  }
  0x3b   :  { %205 = vperm.xlu0 %1826, %v87_v28   ;;  %120 = vperm.xlu1 %1827, %v70_v29   ;;  %v587_v28 = vld [vmem:[%s2743_s4 + $0x98] sm:$0xff]  ;;  %v586_v29 = vld [vmem:[%s2743_s4 + $0x90] sm:$0xff] }
  0x3c   :  { %1554 = vmatmul.msk.bf16.gmra.mxu0 %vm350_vm0, %v1762_v30 }
  0x42   :  { %110 = vperm.xlu2 %1828, %v68_v31   ;;  %v590_v31 = vld [vmem:[%s2743_s4 + $0xb0] sm:$0xff] }
  0x43   :  { %190 = vperm.xlu0 %1826, %v84_v32   ;;  %195 = vperm.xlu1 %1827, %v85_v33  }
  0x4a   :  { %185 = vperm.xlu2 %1828, %v83_v39   ;;  %v589_v39 = vld [vmem:[%s2743_s4 + $0xa8] sm:$0xff] }
  0x4b   :  { %180 = vperm.xlu1 %1827, %v82_v34   ;;  %115 = vperm.xlu0 %1826, %v69_v35   ;;  %v1769_v35 = vld [vmem:[%s2742_s1 + $0x50] sm:$0xff] }
  0x4c   :  { %1555 = vmatmul.msk.bf16.gmra.mxu0 %vm350_vm0, %v1763_v36  ;;  %v1176_v36 = vld [vmem:[%s2744_s6 + $0x70] sm:$0xff] }
  0x52   :  { %672 = vperm.xlu2 %1828, %v582_v43  }
  0x53   :  { %105 = vperm.xlu1 %1827, %v67_v37   ;;  %100 = vperm.xlu0 %1826, %v66_v38   ;;  %v585_v37 = vld [vmem:[%s2743_s4 + $0x88] sm:$0xff] }
  0x5a   :  { %667 = vperm.xlu2 %1828, %v581_v50  }
  0x5b   :  { %662 = vperm.xlu1 %1827, %v580_v41   ;;  %677 = vperm.xlu0 %1826, %v583_v42  }
  0x5c   :  { %1556 = vmatmul.msk.bf16.gmra.mxu0 %vm350_vm0, %v1764_v40  ;;  %v2016_v46 = vpop.permute.xlu2 %240 }
  0x62   :  { %642 = vperm.xlu2 %1828, %v576_v53  }
  0x63   :  { %657 = vperm.xlu1 %1827, %v579_v44   ;;  %652 = vperm.xlu0 %1826, %v578_v45   ;;  %v1175_v44 = vld [vmem:[%s2744_s6 + $0x68] sm:$0xff]  ;;  %v1174_v45 = vld [vmem:[%s2744_s6 + $0x60] sm:$0xff] }
  0x64   :  { %v2040_v54 = vpop.permute.xlu2 %245 }
  0x6a   :  { %637 = vperm.xlu2 %1828, %v575_v60   ;;  %v1173_v60 = vld [vmem:[%s2744_s6 + $0x58] sm:$0xff] }
  0x6b   :  { %632 = vperm.xlu1 %1827, %v574_v48   ;;  %647 = vperm.xlu0 %1826, %v577_v49   ;;  %v584_v49 = vld [vmem:[%s2743_s4 + $0x80] sm:$0xff] }
  0x6c   :  { %1557 = vmatmul.msk.bf16.gmra.mxu0 %vm350_vm0, %v1765_v47  ;;  %v2058_v61 = vpop.permute.xlu2 %230 }
  0x72   :  { %612 = vperm.xlu2 %1828, %v570_v2   ;;  %v1177_v2 = vld [vmem:[%s2744_s6 + $0x78] sm:$0xff] }
  0x73   :  { %627 = vperm.xlu1 %1827, %v573_v51   ;;  %622 = vperm.xlu0 %1826, %v572_v52  }
  0x74   :  { %v2078_v5 = vpop.permute.xlu2 %155 }
  0x75   :  { %v2042_v55 = vpop.permute.xlu0 %250  ;;  %v2044_v56 = vpop.permute.xlu1 %170 }
  0x7a   :  { %607 = vperm.xlu2 %1828, %v569_v10  }
  0x7b   :  { %602 = vperm.xlu1 %1827, %v568_v58   ;;  %617 = vperm.xlu0 %1826, %v571_v59   ;;  %v1770_v58 = vld [vmem:[%s2742_s1 + $0x58] sm:$0xff]  ;;  %v1170_v59 = vld [vmem:[%s2744_s6 + $0x40] sm:$0xff] }
  0x7c   :  { %1558 = vmatmul.msk.bf16.gmra.mxu0 %vm350_vm0, %v1766_v57  ;;  %v2099_v13 = vpop.permute.xlu2 %140 }
  0x7d   :  { %v2061_v62 = vpop.permute.xlu0 %255  ;;  %v2063_v63 = vpop.permute.xlu1 %175 }
  0x82   :  { %742 = vperm.xlu2 %1828, %v596_v17  }
  0x83   :  { %757 = vperm.xlu1 %1827, %v599_v0   ;;  %752 = vperm.xlu0 %1826, %v598_v1  }
  0x84   :  { %v2125_v24 = vpop.permute.xlu2 %215 }
  0x85   :  { %v2074_v3 = vpop.permute.xlu1 %165  ;;  %v2076_v4 = vpop.permute.xlu0 %160 }
  0x89   :  { %v2089_v9 = vpop.f32.mrf.mxu0 }
  0x8a   :  { %737 = vperm.xlu2 %1828, %v595_v25   ;;  %v1172_v25 = vld [vmem:[%s2744_s6 + $0x50] sm:$0xff] }
  0x8b   :  { %732 = vperm.xlu1 %1827, %v594_v7   ;;  %747 = vperm.xlu0 %1826, %v597_v8  }
  0x8c   :  { %1559 = vmatmul.msk.bf16.gmra.mxu0 %vm350_vm0, %v1767_v6  ;;  %v2144_v32 = vpop.permute.xlu2 %200 }
  0x8d   :  { %v2095_v11 = vpop.permute.xlu0 %235  ;;  %v2097_v12 = vpop.permute.xlu1 %150 }
  0x91   :  { %v2107_v16 = vpop.f32.mrf.mxu0 }
  0x92   :  { %712 = vperm.xlu2 %1828, %v590_v31  }
  0x93   :  { %727 = vperm.xlu1 %1827, %v593_v14   ;;  %722 = vperm.xlu0 %1826, %v592_v15  }
  0x94   :  { %v126_v42 = vpop.permute.xlu2 %125 }
  0x95   :  { %v2112_v18 = vpop.permute.xlu0 %220  ;;  %v2114_v19 = vpop.permute.xlu1 %225 }
  0x99   :  { %v413_v23 = vpop.f32.mrf.mxu0 }
  0x9a   :  { %707 = vperm.xlu2 %1828, %v589_v39   ;;  %v1771_v39 = vld [vmem:[%s2742_s1 + $0x60] sm:$0xff] }
  0x9b   :  { %702 = vperm.xlu1 %1827, %v588_v21   ;;  %717 = vperm.xlu0 %1826, %v591_v22   ;;  %v1168_v21 = vld [vmem:[%s2744_s6 + $0x30] sm:$0xff] }
  0x9c   :  { %1560 = vmatmul.msk.bf16.gmra.mxu0 %vm350_vm0, %v1768_v20  ;;  %v111_v0 = vpop.permute.xlu2 %110  ;;  %v1169_v20 = vld [vmem:[%s2744_s6 + $0x38] sm:$0xff] }
  0x9d   :  { %v2131_v26 = vpop.permute.xlu1 %210  ;;  %v2133_v27 = vpop.permute.xlu0 %145  ;;  %v414_v6 = vadd.f32 %v413_v23, %v111_v0 }
  0x9f   :  { %v490_v14 = vmax.f32 %v414_v6, 0.0 }
  0xa1   :  { %v415_v30 = vpop.f32.mrf.mxu0 }
  0xa2   :  { %682 = vperm.xlu2 %1828, %v584_v49   ;;  %v1772_v49 = vld [vmem:[%s2742_s1 + $0x68] sm:$0xff] }
  0xa3   :  { %697 = vperm.xlu1 %1827, %v587_v28   ;;  %692 = vperm.xlu0 %1826, %v586_v29  }
  0xa5   :  { %v136_v33 = vpop.permute.xlu1 %135  ;;  %v131_v34 = vpop.permute.xlu0 %130 }
  0xa9   :  { %v418_v38 = vpop.f32.mrf.mxu0 }
  0xaa   :  { %1255 = vperm.xlu2 %1828, %v1177_v2  }
  0xab   :  { %1250 = vperm.xlu1 %1827, %v1176_v36   ;;  %687 = vperm.xlu0 %1826, %v585_v37  }
  0xac   :  { %1561 = vmatmul.msk.bf16.gmra.mxu0 %vm350_vm0, %v1769_v35 }
  0xad   :  { %v2159_v40 = vpop.permute.xlu0 %205  ;;  %v121_v41 = vpop.permute.xlu1 %120 }
  0xae   :  { %v419_v43 = vadd.f32 %v418_v38, %v121_v41  ;;  %v1164_v41 = vld [vmem:[%s2744_s6 + $0x10] sm:$0xff] }
  0xb0   :  { %v492_v50 = vmax.f32 %v419_v43, 0.0 }
  0xb1   :  { %v420_v47 = vpop.f32.mrf.mxu0 }
  0xb2   :  { %v421_v48 = vadd.f32 %v420_v47, %v126_v42  ;;  %1230 = vperm.xlu2 %1828, %v1172_v25   ;;  %v1167_v42 = vld [vmem:[%s2744_s6 + $0x28] sm:$0xff] }
  0xb3   :  { %1245 = vperm.xlu1 %1827, %v1175_v44   ;;  %1240 = vperm.xlu0 %1826, %v1174_v45   ;;  %v1163_v44 = vld [vmem:[%s2744_s6 + $0x8] sm:$0xff]  ;;  %v1162_v45 = vld [vmem:[%s2744_s6] sm:$0xff] }
  0xb4   :  { %v493_v51 = vmax.f32 %v421_v48, 0.0  ;;  %v1166_v48 = vld [vmem:[%s2744_s6 + $0x20] sm:$0xff] }
  0xb5   :  { %v2170_v52 = vpop.permute.xlu0 %190  ;;  %v2172_v53 = vpop.permute.xlu1 %195 }
  0xb6   :  { %v2174_v57 = vpack.c.bf16 %v493_v51, %v492_v50  ;;  %v1165_v51 = vld [vmem:[%s2744_s6 + $0x18] sm:$0xff] }
  0xb9   :  { %v423_v1 = vpop.f32.mrf.mxu0 }
  0xba   :  { %v424_v15 = vadd.f32 %v423_v1, %v131_v34  ;;  %v1774_v1 = vld [vmem:[%s2742_s1 + $0x78] sm:$0xff] }
  0xbb   :  { %1220 = vperm.xlu1 %1827, %v1170_v59   ;;  %1235 = vperm.xlu0 %1826, %v1173_v60   ;;  %v1773_v59 = vld [vmem:[%s2742_s1 + $0x70] sm:$0xff] }
  0xbc   :  { %1562 = vmatmul.msk.bf16.gmra.mxu0 %vm350_vm0, %v1770_v58  ;;  %v494_v29 = vmax.f32 %v424_v15, 0.0 }
  0xbd   :  { %v2189_v7 = vpop.permute.xlu1 %180  ;;  %v116_v8 = vpop.permute.xlu0 %115 }
  0xbe   :  { %v416_v10 = vadd.f32 %v415_v30, %v116_v8 }
  0xc0   :  { %v491_v17 = vmax.f32 %v416_v10, 0.0 }
  0xc1   :  { %v425_v22 = vpop.f32.mrf.mxu0 }
  0xc2   :  { %v426_v23 = vadd.f32 %v425_v22, %v136_v33  ;;  %v2200_v28 = vpack.c.bf16 %v491_v17, %v490_v14 }
  0xc3   :  { %1215 = vperm.xlu1 %1827, %v1169_v20   ;;  %1210 = vperm.xlu0 %1826, %v1168_v21  }
  0xc4   :  { %v495_v30 = vmax.f32 %v426_v23, 0.0 }
  0xc5   :  { %v106_v31 = vpop.permute.xlu1 %105  ;;  %v101_v34 = vpop.permute.xlu0 %100 }
  0xc6   :  { %v411_v35 = vadd.f32 %v2107_v16, %v106_v31  ;;  %v409_v36 = vadd.f32 %v2089_v9, %v101_v34  ;;  %v2204_v37 = vpack.c.bf16 %v495_v30, %v494_v29  ;;  %v1171_v9 = vld [vmem:[%s2744_s6 + $0x48] sm:$0xff] }
  0xc7   :  { %1225 = vperm.xlu2 %1828, %v1171_v9   ;;  %v1778_v9 = vld [vmem:[%s2745_s3 + $0x4] sm:$0xf0] }
  0xc8   :  { %v489_v33 = vmax.f32 %v411_v35, 0.0  ;;  %v488_v38 = vmax.f32 %v409_v36, 0.0 }
  0xc9   :  { %v428_v43 = vpop.f32.mrf.mxu0 }
  0xca   :  { %v2218_v16 = vpack.c.bf16 %v489_v33, %v488_v38  ;;  %v186_v33 = vpop.permute.xlu2 %185 }
  0xcb   :  { %1190 = vperm.xlu1 %1827, %v1164_v41   ;;  %1205 = vperm.xlu0 %1826, %v1167_v42  }
  0xcc   :  { %1563 = vmatmul.msk.bf16.gmra.mxu0 %vm350_vm0, %v1771_v39 }
  0xcf   :  { %1200 = vperm.xlu2 %1828, %v1166_v48  }
  0xd1   :  { %v430_v47 = vpop.f32.mrf.mxu0 }
  0xd3   :  { %1185 = vperm.xlu1 %1827, %v1163_v44   ;;  %1180 = vperm.xlu0 %1826, %v1162_v45  }
  0xd7   :  { %1195 = vperm.xlu2 %1828, %v1165_v51  }
  0xd9   :  { %v433_v50 = vpop.f32.mrf.mxu0 }
  0xda   :  { %v434_v25 = vadd.f32 %v433_v50, %v2097_v12  ;;  %v1780_v50 = vld [vmem:[%s2745_s3 + $0x14] sm:$0xf0] }
  0xdc   :  { %1564 = vmatmul.msk.bf16.gmra.mxu0 %vm350_vm0, %v1772_v49  ;;  %v1577_v49 = vld [vmem:[%s2745_s3 + $0x10] sm:$0xf] }
  0xe1   :  { %v435_v58 = vpop.f32.mrf.mxu0 }
  0xe2   :  { %v436_v21 = vadd.f32 %v435_v58, %v2078_v5  ;;  %v1578_v58 = vor.u32 %v1780_v50, %v1577_v49  ;;  %v1794_v49 = vld [vmem:[%s2745_s3 + $0x84] sm:$0xf0]  ;;  %v1777_v50 = vld [vmem:[%s2745_s3 + $0x4] sm:$0xf] }
  0xe4   :  { %v499_v31 = vmax.f32 %v436_v21, 0.0 }
  0xe9   :  { %v438_v60 = vpop.f32.mrf.mxu0 }
  0xea   :  { %v439_v15 = vadd.f32 %v438_v60, %v2076_v4 }
  0xec   :  { %1565 = vmatmul.msk.bf16.gmra.mxu0 %vm350_vm0, %v1773_v59  ;;  %v500_v29 = vmax.f32 %v439_v15, 0.0 }
  0xf1   :  { %v440_v0 = vpop.f32.mrf.mxu0 }
  0xf2   :  { %v441_v10 = vadd.f32 %v440_v0, %v2074_v3  ;;  %v429_v3 = vadd.f32 %v428_v43, %v2099_v13 }
  0xf4   :  { %v501_v22 = vmax.f32 %v441_v10, 0.0  ;;  %v496_v36 = vmax.f32 %v429_v3, 0.0 }
  0xf6   :  { %v558_v34 = vpack.c.bf16 %v501_v22, %v500_v29 }
  0xf9   :  { %v443_v2 = vpop.f32.mrf.mxu0 }
  0xfa   :  { %v444_v6 = vadd.f32 %v443_v2, %v2044_v56  ;;  %v431_v56 = vadd.f32 %v430_v47, %v2133_v27  ;;  %v1782_v2 = vld [vmem:[%s2745_s3 + $0x24] sm:$0xf0] }
  0xfc   :  { %1566 = vmatmul.msk.bf16.gmra.mxu0 %vm350_vm0, %v1774_v1  ;;  %v502_v17 = vmax.f32 %v444_v6, 0.0  ;;  %v497_v4 = vmax.f32 %v431_v56, 0.0  ;;  %v1585_v1 = vld [vmem:[%s2745_s3 + $0x20] sm:$0xf] }
  0xfe   :  { %v556_v39 = vpack.c.bf16 %v497_v4, %v496_v36  ;;  %v1617_v36 = vld [vmem:[%s2745_s3 + $0x60] sm:$0xf] }
 0x101   :  { %v445_v8 = vpop.f32.mrf.mxu0 }
 0x102   :  { %v446_v14 = vadd.f32 %v445_v8, %v2063_v63  ;;  %v498_v63 = vmax.f32 %v434_v25, 0.0  ;;  %v1586_v8 = vor.u32 %v1782_v2, %v1585_v1  ;;  %v1786_v25 = vld [vmem:[%s2745_s3 + $0x44] sm:$0xf0]  ;;  %v1781_v2 = vld [vmem:[%s2745_s3 + $0x24] sm:$0xf] }
 0x103   :  { %v1798_v1 = vld [vmem:[%s2745_s3 + $0xa4] sm:$0xf0] }
 0x104   :  { %v503_v20 = vmax.f32 %v446_v14, 0.0  ;;  %v557_v35 = vpack.c.bf16 %v499_v31, %v498_v63  ;;  %v1609_v31 = vld [vmem:[%s2745_s3 + $0x50] sm:$0xf] }
 0x106   :  { %v559_v23 = vpack.c.bf16 %v503_v20, %v502_v17  ;;  %v1784_v20 = vld [vmem:[%s2745_s3 + $0x34] sm:$0xf0] }
 0x108   :  { %920 = vmatpush.bf16.msra.mxu1 %v559_v23 }
 0x109   :  { %v448_v30 = vpop.f32.mrf.mxu0 }
 0x10a   :  { %v449_v5 = vadd.f32 %v448_v30, %v2189_v7  ;;  %v1569_v7 = vld [vmem:[%s2745_s3] sm:$0xf] }
 0x10b   :  { %v1570_v47 = vor.u32 %v1778_v9, %v1569_v7 }
 0x10c   :  { %921 = vmatpush.bf16.msra.mxu1 %v558_v34  ;;  %v504_v41 = vmax.f32 %v449_v5, 0.0  ;;  %v1788_v34 = vld [vmem:[%s2745_s3 + $0x54] sm:$0xf0]  ;;  %v1790_v5 = vld [vmem:[%s2745_s3 + $0x64] sm:$0xf0] }
 0x10d   :  { %v1610_v63 = vor.u32 %v1788_v34, %v1609_v31 }
 0x110   :  { %922 = vmatpush.bf16.msra.mxu1 %v557_v35 }
 0x111   :  { %v450_v38 = vpop.f32.mrf.mxu0 }
 0x112   :  { %v451_v12 = vadd.f32 %v450_v38, %v186_v33 }
 0x114   :  { %v505_v42 = vmax.f32 %v451_v12, 0.0  ;;  %923 = vmatpush.bf16.msra.mxu1 %v556_v39  ;;  %v1618_v39 = vor.u32 %v1790_v5, %v1617_v36 }
 0x116   :  { %v2254_v27 = vpack.c.bf16 %v505_v42, %v504_v41 }
 0x118   :  { %924 = vmatpush.bf16.msra.mxu1 %v2204_v37 }
 0x119   :  { %v453_v13 = vpop.f32.mrf.mxu0 }
 0x11a   :  { %v454_v43 = vadd.f32 %v453_v13, %v2170_v52 }
 0x11c   :  { %925 = vmatpush.bf16.msra.mxu1 %v2174_v57  ;;  %v506_v37 = vmax.f32 %v454_v43, 0.0 }
 0x120   :  { %926 = vmatpush.bf16.msra.mxu1 %v2200_v28 }
 0x121   :  { %v455_v44 = vpop.f32.mrf.mxu0 }
 0x122   :  { %v456_v45 = vadd.f32 %v455_v44, %v2172_v53 }
 0x124   :  { %v507_v48 = vmax.f32 %v456_v45, 0.0  ;;  %927 = vmatpush.bf16.msra.mxu1 %v2218_v16 }
 0x126   :  { %v2268_v57 = vpack.c.bf16 %v507_v48, %v506_v37 }
 0x127   :  { %928 = vmatmul.bf16.vlgmr.msra.gmra.mxu1 %v1570_v47 }
 0x129   :  { %v458_v52 = vpop.f32.mrf.mxu0 }
 0x12a   :  { %v459_v28 = vadd.f32 %v458_v52, %v2144_v32 }
 0x12c   :  { %v508_v59 = vmax.f32 %v459_v28, 0.0 }
 0x131   :  { %v460_v53 = vpop.f32.mrf.mxu0 }
 0x132   :  { %v461_v51 = vadd.f32 %v460_v53, %v2159_v40  ;;  %v1571_v53 = vld [vmem:[%s2745_s3 + $0x8] sm:$0xf0] }
 0x134   :  { %v509_v16 = vmax.f32 %v461_v51, 0.0 }
 0x136   :  { %v2278_v60 = vpack.c.bf16 %v509_v16, %v508_v59  ;;  %v1796_v59 = vld [vmem:[%s2745_s3 + $0x94] sm:$0xf0]  ;;  %v1779_v16 = vld [vmem:[%s2745_s3 + $0x14] sm:$0xf] }
 0x137   :  { %933 = vmatmul.bf16.gmra.mxu1 %v1578_v58  ;;  %v1574_v58 = vor.u32 %v1777_v50, %v1571_v53  ;;  %v1635_v50 = vld [vmem:[%s2745_s3 + $0x88] sm:$0xf0] }
 0x139   :  { %v463_v0 = vpop.f32.mrf.mxu0 }
 0x13a   :  { %v464_v32 = vadd.f32 %v463_v0, %v2131_v26  ;;  %v1593_v26 = vld [vmem:[%s2745_s3 + $0x30] sm:$0xf] }
 0x13b   :  { %v1594_v22 = vor.u32 %v1784_v20, %v1593_v26 }
 0x13c   :  { %v510_v10 = vmax.f32 %v464_v32, 0.0  ;;  %v1649_v32 = vld [vmem:[%s2745_s3 + $0xa0] sm:$0xf] }
 0x141   :  { %v465_v6 = vpop.f32.mrf.mxu0 }
 0x142   :  { %v466_v40 = vadd.f32 %v465_v6, %v2125_v24  ;;  %v1601_v24 = vld [vmem:[%s2745_s3 + $0x40] sm:$0xf]  ;;  %v1587_v6 = vld [vmem:[%s2745_s3 + $0x28] sm:$0xf0] }
 0x143   :  { %v1602_v30 = vor.u32 %v1786_v25, %v1601_v24  ;;  %v1802_v24 = vld [vmem:[%s2745_s3 + $0xc4] sm:$0xf0]  ;;  %v1785_v25 = vld [vmem:[%s2745_s3 + $0x44] sm:$0xf] }
 0x144   :  { %v511_v14 = vmax.f32 %v466_v40, 0.0  ;;  %v1650_v40 = vor.u32 %v1798_v1, %v1649_v32  ;;  %v1795_v32 = vld [vmem:[%s2745_s3 + $0x94] sm:$0xf]  ;;  %v1643_v1 = vld [vmem:[%s2745_s3 + $0x98] sm:$0xf0] }
 0x146   :  { %v563_v15 = vpack.c.bf16 %v511_v14, %v510_v10  ;;  %v1657_v10 = vld [vmem:[%s2745_s3 + $0xb0] sm:$0xf]  ;;  %v1800_v14 = vld [vmem:[%s2745_s3 + $0xb4] sm:$0xf0] }
 0x147   :  { %938 = vmatmul.bf16.gmra.mxu1 %v1586_v8  ;;  %v1590_v8 = vor.u32 %v1781_v2, %v1587_v6  ;;  %v1658_v20 = vor.u32 %v1800_v14, %v1657_v10 }
 0x149   :  { %v468_v17 = vpop.f32.mrf.mxu0 }
 0x151   :  { %v470_v21 = vpop.f32.mrf.mxu0 }
 0x152   :  { %v471_v45 = vadd.f32 %v470_v21, %v2114_v19 }
 0x157   :  { %943 = vmatmul.bf16.gmra.mxu1 %v1594_v22 }
 0x159   :  { %v473_v23 = vpop.f32.mrf.mxu0 }
 0x15a   :  { %v474_v9 = vadd.f32 %v473_v23, %v2058_v61  ;;  %v1792_v61 = vld [vmem:[%s2745_s3 + $0x74] sm:$0xf0]  ;;  %v1665_v23 = vld [vmem:[%s2745_s3 + $0xc0] sm:$0xf] }
 0x15c   :  { %v514_v37 = vmax.f32 %v474_v9, 0.0 }
 0x161   :  { %v475_v29 = vpop.f32.mrf.mxu0 }
 0x167   :  { %948 = vmatmul.bf16.gmra.mxu1 %v1602_v30  ;;  %v1666_v30 = vor.u32 %v1802_v24, %v1665_v23 }
 0x169   :  { %v478_v56 = vpop.f32.mrf.mxu0 }
 0x16a   :  { %v479_v41 = vadd.f32 %v478_v56, %v2016_v46  ;;  %v513_v46 = vmax.f32 %v471_v45, 0.0 }
 0x16c   :  { %v516_v44 = vmax.f32 %v479_v41, 0.0  ;;  %v1806_v41 = vld [vmem:[%s2745_s3 + $0xe4] sm:$0xf0] }
 0x171   :  { %v480_v3 = vpop.f32.mrf.mxu0 }
 0x172   :  { %v481_v38 = vadd.f32 %v480_v3, %v2040_v54  ;;  %v1673_v3 = vld [vmem:[%s2745_s3 + $0xd0] sm:$0xf] }
 0x174   :  { %v517_v43 = vmax.f32 %v481_v38, 0.0  ;;  %v2407_v38 = vpop.permute.xlu2 %672 }
 0x176   :  { %v566_v54 = vpack.c.bf16 %v517_v43, %v516_v44 }
 0x177   :  { %953 = vmatmul.bf16.gmra.mxu1 %v1610_v63  ;;  %v1804_v63 = vld [vmem:[%s2745_s3 + $0xd4] sm:$0xf0] }
 0x178   :  { %v1674_v36 = vor.u32 %v1804_v63, %v1673_v3 }
 0x179   :  { %v483_v4 = vpop.f32.mrf.mxu0 }
 0x17a   :  { %v484_v35 = vadd.f32 %v483_v4, %v2042_v55  ;;  %v476_v55 = vadd.f32 %v475_v29, %v2095_v11  ;;  %v1625_v11 = vld [vmem:[%s2745_s3 + $0x70] sm:$0xf]  ;;  %v1603_v29 = vld [vmem:[%s2745_s3 + $0x48] sm:$0xf0]  ;;  %v1787_v4 = vld [vmem:[%s2745_s3 + $0x54] sm:$0xf] }
 0x17b   :  { %v1626_v19 = vor.u32 %v1792_v61, %v1625_v11  ;;  %v1606_v56 = vor.u32 %v1785_v25, %v1603_v29  ;;  %v1797_v25 = vld [vmem:[%s2745_s3 + $0xa4] sm:$0xf] }
 0x17c   :  { %v518_v42 = vmax.f32 %v484_v35, 0.0  ;;  %v515_v47 = vmax.f32 %v476_v55, 0.0  ;;  %v1611_v35 = vld [vmem:[%s2745_s3 + $0x58] sm:$0xf0]  ;;  %v2425_v9 = vpop.permute.xlu2 %667 }
 0x17d   :  { %v1614_v5 = vor.u32 %v1787_v4, %v1611_v35 }
 0x17e   :  { %v565_v48 = vpack.c.bf16 %v515_v47, %v514_v37  ;;  %v1689_v47 = vld [vmem:[%s2745_s3 + $0xf0] sm:$0xf]  ;;  %v1627_v37 = vld [vmem:[%s2745_s3 + $0x78] sm:$0xf0] }
 0x181   :  { %v485_v33 = vpop.f32.mrf.mxu0 }
 0x182   :  { %v486_v12 = vadd.f32 %v485_v33, %v2061_v62  ;;  %v469_v62 = vadd.f32 %v468_v17, %v2112_v18  ;;  %v1633_v18 = vld [vmem:[%s2745_s3 + $0x80] sm:$0xf]  ;;  %v1595_v17 = vld [vmem:[%s2745_s3 + $0x38] sm:$0xf0] }
 0x183   :  { %v1634_v51 = vor.u32 %v1794_v49, %v1633_v18  ;;  %v1793_v49 = vld [vmem:[%s2745_s3 + $0x84] sm:$0xf] }
 0x184   :  { %v519_v13 = vmax.f32 %v486_v12, 0.0  ;;  %v512_v52 = vmax.f32 %v469_v62, 0.0  ;;  %v1681_v12 = vld [vmem:[%s2745_s3 + $0xe0] sm:$0xf]  ;;  %v1791_v62 = vld [vmem:[%s2745_s3 + $0x74] sm:$0xf] }
 0x185   :  { %v1682_v43 = vor.u32 %v1806_v41, %v1681_v12 }
 0x186   :  { %v567_v7 = vpack.c.bf16 %v519_v13, %v518_v42  ;;  %v564_v28 = vpack.c.bf16 %v513_v46, %v512_v52  ;;  %v1789_v42 = vld [vmem:[%s2745_s3 + $0x64] sm:$0xf]  ;;  %v1619_v13 = vld [vmem:[%s2745_s3 + $0x68] sm:$0xf0]  ;;  %v2443_v46 = vpop.permute.xlu2 %642  ;;  %v1630_v52 = vor.u32 %v1791_v62, %v1627_v37 }
 0x187   :  { %958 = vmatmul.bf16.gmra.mxu1 %v1618_v39  ;;  %v2412_v39 = vpop.permute.xlu1 %662 }
 0x188   :  { %1009 = vmatpush.bf16.msra.mxu2 %v567_v7  ;;  %v1622_v7 = vor.u32 %v1789_v42, %v1619_v13  ;;  %v1659_v42 = vld [vmem:[%s2745_s3 + $0xb8] sm:$0xf0] }
 0x18c   :  { %1010 = vmatpush.bf16.msra.mxu2 %v566_v54  ;;  %v1808_v54 = vld [vmem:[%s2745_s3 + $0xf4] sm:$0xf0] }
 0x18f   :  { %v2427_v44 = vpop.permute.xlu1 %657 }
 0x190   :  { %1011 = vmatpush.bf16.msra.mxu2 %v565_v48  ;;  %v1690_v48 = vor.u32 %v1808_v54, %v1689_v47 }
 0x194   :  { %1012 = vmatpush.bf16.msra.mxu2 %v564_v28  ;;  %v2447_v28 = vpop.permute.xlu0 %677 }
 0x197   :  { %963 = vmatmul.bf16.gmra.mxu1 %v1626_v19  ;;  %v633_v11 = vpop.permute.xlu1 %632  ;;  %v638_v19 = vpop.permute.xlu2 %637 }
 0x198   :  { %1013 = vmatpush.bf16.msra.mxu2 %v563_v15  ;;  %v1783_v15 = vld [vmem:[%s2745_s3 + $0x34] sm:$0xf] }
 0x199   :  { %v1598_v21 = vor.u32 %v1783_v15, %v1595_v17 }
 0x19c   :  { %1014 = vmatpush.bf16.msra.mxu2 %v2278_v60  ;;  %v1579_v60 = vld [vmem:[%s2745_s3 + $0x18] sm:$0xf0]  ;;  %v2455_v53 = vpop.permute.xlu0 %652 }
 0x19f   :  { %v628_v18 = vpop.permute.xlu1 %627 }
 0x1a0   :  { %1015 = vmatpush.bf16.msra.mxu2 %v2268_v57  ;;  %v1641_v57 = vld [vmem:[%s2745_s3 + $0x90] sm:$0xf] }
 0x1a1   :  { %v1642_v0 = vor.u32 %v1796_v59, %v1641_v57 }
 0x1a4   :  { %1016 = vmatpush.bf16.msra.mxu2 %v2254_v27  ;;  %v1582_v27 = vor.u32 %v1779_v16, %v1579_v60  ;;  %v929_v26 = vpop.f32.mrf.mxu1 }
 0x1a7   :  { %968 = vmatmul.bf16.gmra.mxu1 %v1634_v51  ;;  %1017 = vmatmul.bf16.vlgmr.msra.gmra.mxu2 %v1574_v58  ;;  %v1638_v51 = vor.u32 %v1793_v49, %v1635_v50  ;;  %v613_v58 = vpop.permute.xlu2 %612  ;;  %v603_v57 = vpop.permute.xlu1 %602 }
 0x1a8   :  { %v930_v59 = vadd.f32 %v929_v26, %v603_v57 }
 0x1ac   :  { %v931_v22 = vpop.f32.mrf.mxu1 }
 0x1b4   :  { %v2389_v31 = vpop.f32.mrf.mxu1 }
 0x1b7   :  { %973 = vmatmul.bf16.gmra.mxu1 %v1642_v0  ;;  %1022 = vmatmul.bf16.gmra.mxu2 %v1582_v27  ;;  %v2457_v0 = vpop.permute.xlu0 %647  ;;  %v608_v27 = vpop.permute.xlu2 %607 }
 0x1b8   :  { %v932_v2 = vadd.f32 %v931_v22, %v608_v27  ;;  %v1651_v22 = vld [vmem:[%s2745_s3 + $0xa8] sm:$0xf0] }
 0x1b9   :  { %v1654_v63 = vor.u32 %v1797_v25, %v1651_v22 }
 0x1bc   :  { %v2391_v34 = vpop.f32.mrf.mxu1 }
 0x1bf   :  { %v623_v15 = vpop.permute.xlu0 %622 }
 0x1c4   :  { %v2405_v33 = vpop.f32.mrf.mxu1 }
 0x1c7   :  { %978 = vmatmul.bf16.gmra.mxu1 %v1650_v40  ;;  %1027 = vmatmul.bf16.gmra.mxu2 %v1590_v8  ;;  %v1646_v8 = vor.u32 %v1795_v32, %v1643_v1  ;;  %v618_v24 = vpop.permute.xlu0 %617 }
 0x1c8   :  { %v937_v29 = vadd.f32 %v2391_v34, %v618_v24  ;;  %v1799_v34 = vld [vmem:[%s2745_s3 + $0xb4] sm:$0xf] }
 0x1c9   :  { %v1662_v47 = vor.u32 %v1799_v34, %v1659_v42 }
 0x1cc   :  { %v2423_v55 = vpop.f32.mrf.mxu1 }
 0x1cd   :  { %v942_v13 = vadd.f32 %v2423_v55, %v628_v18  ;;  %v1667_v55 = vld [vmem:[%s2745_s3 + $0xc8] sm:$0xf0] }
 0x1d4   :  { %v2429_v45 = vpop.f32.mrf.mxu1 }
 0x1d7   :  { %983 = vmatmul.bf16.gmra.mxu1 %v1658_v20  ;;  %1032 = vmatmul.bf16.gmra.mxu2 %v1598_v21  ;;  %v935_v20 = vadd.f32 %v2389_v31, %v613_v58 }
 0x1dc   :  { %v2445_v61 = vpop.f32.mrf.mxu1 }
 0x1dd   :  { %v947_v18 = vadd.f32 %v2445_v61, %v638_v19  ;;  %v1675_v61 = vld [vmem:[%s2745_s3 + $0xd8] sm:$0xf0] }
 0x1e4   :  { %v949_v26 = vpop.f32.mrf.mxu1 }
 0x1e7   :  { %988 = vmatmul.bf16.gmra.mxu1 %v1666_v30  ;;  %1037 = vmatmul.bf16.gmra.mxu2 %v1606_v56 }
 0x1ec   :  { %v2475_v30 = vpop.f32.mrf.mxu1 }
 0x1f4   :  { %v2480_v41 = vpop.f32.mrf.mxu1 }
 0x1f7   :  { %993 = vmatmul.bf16.gmra.mxu1 %v1674_v36  ;;  %1042 = vmatmul.bf16.gmra.mxu2 %v1614_v5  ;;  %v940_v36 = vadd.f32 %v2405_v33, %v623_v15  ;;  %v1805_v15 = vld [vmem:[%s2745_s3 + $0xe4] sm:$0xf] }
 0x1fc   :  { %v956_v33 = vpop.f32.mrf.mxu1 }
 0x204   :  { %v959_v50 = vpop.f32.mrf.mxu1 }
 0x207   :  { %998 = vmatmul.bf16.gmra.mxu1 %v1682_v43  ;;  %1047 = vmatmul.bf16.gmra.mxu2 %v1622_v7 }
 0x20c   :  { %v961_v27 = vpop.f32.mrf.mxu1 }
 0x217   :  { %1003 = vmatmul.bf16.gmra.mxu1 %v1690_v48  ;;  %1052 = vmatmul.bf16.gmra.mxu2 %v1630_v52  ;;  %v945_v48 = vadd.f32 %v2429_v45, %v633_v11  ;;  %v950_v11 = vadd.f32 %v949_v26, %v2443_v46  ;;  %v1683_v26 = vld [vmem:[%s2745_s3 + $0xe8] sm:$0xf0] }
 0x227   :  { %1057 = vmatmul.bf16.gmra.mxu2 %v1638_v51  ;;  %v1801_v51 = vld [vmem:[%s2745_s3 + $0xc4] sm:$0xf] }
 0x22a   :  { %v1018_v16 = vpop.f32.mrf.mxu2 }
 0x22b   :  { %v1019_v60 = vadd.f32 %v1018_v16, %v930_v59  ;;  %v1670_v59 = vor.u32 %v1801_v51, %v1667_v55  ;;  %v957_v55 = vadd.f32 %v956_v33, %v2427_v44 }
 0x22d   :  { %v1098_v10 = vmax.f32 %v1019_v60, 0.0 }
 0x232   :  { %v1020_v6 = vpop.f32.mrf.mxu2 }
 0x233   :  { %v1021_v40 = vadd.f32 %v1020_v6, %v932_v2  ;;  %v1803_v2 = vld [vmem:[%s2745_s3 + $0xd4] sm:$0xf] }
 0x234   :  { %v1678_v6 = vor.u32 %v1803_v2, %v1675_v61 }
 0x235   :  { %v1099_v14 = vmax.f32 %v1021_v40, 0.0  ;;  %v964_v40 = vpop.f32.mrf.mxu1 }
 0x237   :  { %1062 = vmatmul.bf16.gmra.mxu2 %v1646_v8  ;;  %v2465_v17 = vpack.c.bf16 %v1099_v14, %v1098_v10  ;;  %v2510_v10 = vpop.permute.xlu0 %752  ;;  %v2512_v14 = vpop.permute.xlu2 %742 }
 0x23a   :  { %v1023_v21 = vpop.f32.mrf.mxu2 }
 0x23b   :  { %v1024_v23 = vadd.f32 %v1023_v21, %v935_v20  ;;  %v1686_v21 = vor.u32 %v1805_v15, %v1683_v26 }
 0x23d   :  { %v1100_v4 = vmax.f32 %v1024_v23, 0.0  ;;  %v966_v46 = vpop.f32.mrf.mxu1 }
 0x23f   :  { %v2520_v23 = vpop.permute.xlu0 %747  ;;  %v2522_v25 = vpop.permute.xlu2 %737 }
 0x242   :  { %v1025_v56 = vpop.f32.mrf.mxu2 }
 0x243   :  { %v1026_v3 = vadd.f32 %v1025_v56, %v937_v29  ;;  %v1807_v29 = vld [vmem:[%s2745_s3 + $0xf4] sm:$0xf]  ;;  %v1691_v56 = vld [vmem:[%s2745_s3 + $0xf8] sm:$0xf0] }
 0x245   :  { %v1101_v31 = vmax.f32 %v1026_v3, 0.0  ;;  %v969_v24 = vpop.f32.mrf.mxu1 }
 0x247   :  { %1067 = vmatmul.bf16.gmra.mxu2 %v1654_v63  ;;  %v2477_v35 = vpack.c.bf16 %v1101_v31, %v1100_v4  ;;  %v2530_v3 = vpop.permute.xlu0 %722  ;;  %v1694_v31 = vor.u32 %v1807_v29, %v1691_v56 }
 0x24a   :  { %v1028_v5 = vpop.f32.mrf.mxu2 }
 0x24b   :  { %v1029_v12 = vadd.f32 %v1028_v5, %v940_v36  ;;  %v2532_v36 = vpop.permute.xlu2 %712  ;;  %v2534_v5 = vpop.permute.xlu1 %757 }
 0x24d   :  { %v1102_v54 = vmax.f32 %v1029_v12, 0.0  ;;  %v971_v63 = vpop.f32.mrf.mxu1 }
 0x24f   :  { %v2536_v34 = vpop.permute.xlu0 %717 }
 0x252   :  { %v1030_v43 = vpop.f32.mrf.mxu2 }
 0x253   :  { %v1031_v7 = vadd.f32 %v1030_v43, %v942_v13  ;;  %v2538_v13 = vpop.permute.xlu2 %707  ;;  %v965_v43 = vadd.f32 %v964_v40, %v2407_v38  ;;  %v955_v38 = vadd.f32 %v2480_v41, %v2455_v53 }
 0x255   :  { %v1103_v62 = vmax.f32 %v1031_v7, 0.0  ;;  %v974_v42 = vpop.f32.mrf.mxu1  ;;  %v962_v7 = vadd.f32 %v961_v27, %v2425_v9  ;;  %v952_v27 = vadd.f32 %v2475_v30, %v2457_v0 }
 0x257   :  { %1072 = vmatmul.bf16.gmra.mxu2 %v1662_v47  ;;  %v2489_v37 = vpack.c.bf16 %v1103_v62, %v1102_v54  ;;  %v967_v47 = vadd.f32 %v966_v46, %v2447_v28  ;;  %v2543_v62 = vpop.permute.xlu1 %732 }
 0x25a   :  { %v1033_v52 = vpop.f32.mrf.mxu2 }
 0x25b   :  { %v1034_v49 = vadd.f32 %v1033_v52, %v945_v48  ;;  %v960_v52 = vadd.f32 %v959_v50, %v2412_v39 }
 0x25d   :  { %v1104_v16 = vmax.f32 %v1034_v49, 0.0 }
 0x25f   :  { %v2551_v40 = vpop.permute.xlu1 %727 }
 0x262   :  { %v1035_v58 = vpop.f32.mrf.mxu2 }
 0x263   :  { %v1036_v57 = vadd.f32 %v1035_v58, %v947_v18 }
 0x265   :  { %v1105_v60 = vmax.f32 %v1036_v57, 0.0 }
 0x267   :  { %1077 = vmatmul.bf16.gmra.mxu2 %v1670_v59  ;;  %v2499_v45 = vpack.c.bf16 %v1105_v60, %v1104_v16  ;;  %v693_v59 = vpop.permute.xlu0 %692  ;;  %v976_v16 = vpop.f32.mrf.mxu1 }
 0x268   :  { %v975_v56 = vadd.f32 %v974_v42, %v693_v59 }
 0x26a   :  { %v1038_v32 = vpop.f32.mrf.mxu2 }
 0x26b   :  { %v2502_v1 = vadd.f32 %v1038_v32, %v950_v11  ;;  %v683_v11 = vpop.permute.xlu2 %682 }
 0x26c   :  { %v970_v39 = vadd.f32 %v969_v24, %v683_v11 }
 0x26d   :  { %v1106_v0 = vmax.f32 %v2502_v1, 0.0 }
 0x26f   :  { %v688_v15 = vpop.permute.xlu0 %687  ;;  %v979_v26 = vpop.f32.mrf.mxu1 }
 0x272   :  { %v1040_v19 = vpop.f32.mrf.mxu2 }
 0x273   :  { %v1041_v33 = vadd.f32 %v1040_v19, %v952_v27 }
 0x275   :  { %v1107_v53 = vmax.f32 %v1041_v33, 0.0 }
 0x277   :  { %1082 = vmatmul.bf16.gmra.mxu2 %v1678_v6 }
 0x27a   :  { %v1043_v8 = vpop.f32.mrf.mxu2 }
 0x27b   :  { %v1044_v50 = vadd.f32 %v1043_v8, %v955_v38 }
 0x27d   :  { %v1108_v46 = vmax.f32 %v1044_v50, 0.0  ;;  %v1713_v50 = vld [vmem:[%s2746_s5 + $0x20] sm:$0xf] }
 0x282   :  { %v1045_v20 = vpop.f32.mrf.mxu2 }
 0x283   :  { %v1046_v9 = vadd.f32 %v1045_v20, %v957_v55  ;;  %v972_v20 = vadd.f32 %v971_v63, %v688_v15 }
 0x285   :  { %v1109_v2 = vmax.f32 %v1046_v9, 0.0 }
 0x287   :  { %1087 = vmatmul.bf16.gmra.mxu2 %v1686_v21  ;;  %v1151_v41 = vpack.c.bf16 %v1109_v2, %v1108_v46  ;;  %v1150_v21 = vpack.c.bf16 %v1107_v53, %v1106_v0 }
 0x28a   :  { %v1048_v22 = vpop.f32.mrf.mxu2 }
 0x28b   :  { %v1049_v18 = vadd.f32 %v1048_v22, %v960_v52  ;;  %v703_v22 = vpop.permute.xlu1 %702 }
 0x28d   :  { %v1110_v32 = vmax.f32 %v1049_v18, 0.0 }
 0x292   :  { %v1050_v4 = vpop.f32.mrf.mxu2 }
 0x293   :  { %v1051_v49 = vadd.f32 %v1050_v4, %v962_v7  ;;  %v981_v4 = vpop.f32.mrf.mxu1  ;;  %v698_v63 = vpop.permute.xlu1 %697  ;;  %v1810_v7 = vld [vmem:[%s2746_s5 + $0x4] sm:$0xf0] }
 0x294   :  { %v977_v1 = vadd.f32 %v976_v16, %v698_v63  ;;  %v982_v18 = vadd.f32 %v981_v4, %v2538_v13  ;;  %v1820_v63 = vld [vmem:[%s2746_s5 + $0x54] sm:$0xf0] }
 0x295   :  { %v1111_v28 = vmax.f32 %v1051_v49, 0.0 }
 0x297   :  { %1092 = vmatmul.bf16.gmra.mxu2 %v1694_v31  ;;  %v1152_v6 = vpack.c.bf16 %v1111_v28, %v1110_v32  ;;  %v1814_v32 = vld [vmem:[%s2746_s5 + $0x24] sm:$0xf0] }
 0x29a   :  { %v1053_v12 = vpop.f32.mrf.mxu2 }
 0x29b   :  { %v1054_v54 = vadd.f32 %v1053_v12, %v965_v43  ;;  %v1697_v43 = vld [vmem:[%s2746_s5] sm:$0xf] }
 0x29d   :  { %v1112_v58 = vmax.f32 %v1054_v54, 0.0  ;;  %v1698_v54 = vor.u32 %v1810_v7, %v1697_v43 }
 0x2a2   :  { %v1055_v48 = vpop.f32.mrf.mxu2 }
 0x2a3   :  { %v1056_v51 = vadd.f32 %v1055_v48, %v967_v47 }
 0x2a5   :  { %v1113_v57 = vmax.f32 %v1056_v51, 0.0 }
 0x2a7   :  { %v1153_v60 = vpack.c.bf16 %v1113_v57, %v1112_v58  ;;  %v1705_v58 = vld [vmem:[%s2746_s5 + $0x10] sm:$0xf]  ;;  %v1812_v57 = vld [vmem:[%s2746_s5 + $0x14] sm:$0xf0] }
 0x2a9   :  { %1338 = vmatpush.bf16.msra.mxu3 %v1153_v60 }
 0x2aa   :  { %v1058_v44 = vpop.f32.mrf.mxu2 }
 0x2ab   :  { %v1059_v61 = vadd.f32 %v1058_v44, %v970_v39 }
 0x2ad   :  { %1339 = vmatpush.bf16.msra.mxu3 %v1152_v6  ;;  %v1114_v24 = vmax.f32 %v1059_v61, 0.0  ;;  %v1714_v61 = vor.u32 %v1814_v32, %v1713_v50 }
 0x2b1   :  { %1340 = vmatpush.bf16.msra.mxu3 %v1151_v41 }
 0x2b2   :  { %v1060_v30 = vpop.f32.mrf.mxu2 }
 0x2b3   :  { %v1061_v8 = vadd.f32 %v1060_v30, %v972_v20  ;;  %v1816_v20 = vld [vmem:[%s2746_s5 + $0x34] sm:$0xf0] }
 0x2b5   :  { %v1115_v19 = vmax.f32 %v1061_v8, 0.0  ;;  %1341 = vmatpush.bf16.msra.mxu3 %v1150_v21 }
 0x2b7   :  { %v2554_v29 = vpack.c.bf16 %v1115_v19, %v1114_v24  ;;  %v1818_v19 = vld [vmem:[%s2746_s5 + $0x44] sm:$0xf0] }
 0x2b9   :  { %1342 = vmatpush.bf16.msra.mxu3 %v2499_v45  ;;  %v984_v45 = vpop.f32.mrf.mxu1 }
 0x2ba   :  { %v1063_v31 = vpop.f32.mrf.mxu2  ;;  %v985_v11 = vadd.f32 %v984_v45, %v2532_v36 }
 0x2bb   :  { %v1064_v12 = vadd.f32 %v1063_v31, %v975_v56 }
 0x2bd   :  { %1343 = vmatpush.bf16.msra.mxu3 %v2489_v37  ;;  %v1116_v48 = vmax.f32 %v1064_v12, 0.0  ;;  %v1737_v12 = vld [vmem:[%s2746_s5 + $0x50] sm:$0xf] }
 0x2be   :  { %v1738_v7 = vor.u32 %v1820_v63, %v1737_v12  ;;  %v1819_v12 = vld [vmem:[%s2746_s5 + $0x54] sm:$0xf]  ;;  %v1739_v63 = vld [vmem:[%s2746_s5 + $0x58] sm:$0xf0] }
 0x2c1   :  { %1344 = vmatpush.bf16.msra.mxu3 %v2477_v35  ;;  %v980_v35 = vadd.f32 %v979_v26, %v703_v22  ;;  %v986_v55 = vpop.f32.mrf.mxu1  ;;  %v1721_v26 = vld [vmem:[%s2746_s5 + $0x30] sm:$0xf] }
 0x2c2   :  { %v1065_v42 = vpop.f32.mrf.mxu2  ;;  %v987_v39 = vadd.f32 %v986_v55, %v2536_v34  ;;  %v1722_v30 = vor.u32 %v1816_v20, %v1721_v26 }
 0x2c3   :  { %v1066_v47 = vadd.f32 %v1065_v42, %v977_v1 }
 0x2c5   :  { %v1117_v52 = vmax.f32 %v1066_v47, 0.0  ;;  %1345 = vmatpush.bf16.msra.mxu3 %v2465_v17  ;;  %v1706_v17 = vor.u32 %v1812_v57, %v1705_v58 }
 0x2c7   :  { %v2566_v37 = vpack.c.bf16 %v1117_v52, %v1116_v48 }
 0x2c8   :  { %1346 = vmatmul.bf16.vlgmr.msra.gmra.mxu3 %v1698_v54 }
 0x2c9   :  { %v989_v60 = vpop.f32.mrf.mxu1 }
 0x2ca   :  { %v1068_v49 = vpop.f32.mrf.mxu2  ;;  %v990_v36 = vadd.f32 %v989_v60, %v2530_v3  ;;  %v1729_v3 = vld [vmem:[%s2746_s5 + $0x40] sm:$0xf] }
 0x2cb   :  { %v1069_v51 = vadd.f32 %v1068_v49, %v980_v35  ;;  %v1730_v56 = vor.u32 %v1818_v19, %v1729_v3  ;;  %v1745_v35 = vld [vmem:[%s2746_s5 + $0x60] sm:$0xf]  ;;  %v1822_v49 = vld [vmem:[%s2746_s5 + $0x64] sm:$0xf0]  ;;  %v1817_v19 = vld [vmem:[%s2746_s5 + $0x44] sm:$0xf] }
 0x2cc   :  { %v1746_v57 = vor.u32 %v1822_v49, %v1745_v35 }
 0x2cd   :  { %v1118_v38 = vmax.f32 %v1069_v51, 0.0 }
 0x2d1   :  { %v991_v44 = vpop.f32.mrf.mxu1 }
 0x2d2   :  { %v1070_v59 = vpop.f32.mrf.mxu2  ;;  %v992_v60 = vadd.f32 %v991_v44, %v2551_v40  ;;  %v1824_v40 = vld [vmem:[%s2746_s5 + $0x74] sm:$0xf0] }
 0x2d3   :  { %v1071_v16 = vadd.f32 %v1070_v59, %v982_v18 }
 0x2d5   :  { %v1119_v9 = vmax.f32 %v1071_v16, 0.0 }
 0x2d7   :  { %v2575_v28 = vpack.c.bf16 %v1119_v9, %v1118_v38 }
 0x2d8   :  { %1351 = vmatmul.bf16.gmra.mxu3 %v1706_v17 }
 0x2d9   :  { %v994_v15 = vpop.f32.mrf.mxu1 }
 0x2da   :  { %v1073_v13 = vpop.f32.mrf.mxu2  ;;  %v995_v16 = vadd.f32 %v994_v15, %v2543_v62  ;;  %v1753_v62 = vld [vmem:[%s2746_s5 + $0x70] sm:$0xf]  ;;  %v1813_v15 = vld [vmem:[%s2746_s5 + $0x24] sm:$0xf] }
 0x2db   :  { %v1074_v27 = vadd.f32 %v1073_v13, %v985_v11 }
 0x2dd   :  { %v1120_v6 = vmax.f32 %v1074_v27, 0.0 }
 0x2e1   :  { %v996_v8 = vpop.f32.mrf.mxu1 }
 0x2e2   :  { %v1075_v33 = vpop.f32.mrf.mxu2 }
 0x2e3   :  { %v1076_v2 = vadd.f32 %v1075_v33, %v987_v39 }
 0x2e5   :  { %v1121_v46 = vmax.f32 %v1076_v2, 0.0  ;;  %v1754_v2 = vor.u32 %v1824_v40, %v1753_v62 }
 0x2e7   :  { %v2585_v53 = vpack.c.bf16 %v1121_v46, %v1120_v6  ;;  %v1699_v6 = vld [vmem:[%s2746_s5 + $0x8] sm:$0xf0] }
 0x2e8   :  { %1356 = vmatmul.bf16.gmra.mxu3 %v1714_v61  ;;  %v1809_v61 = vld [vmem:[%s2746_s5 + $0x4] sm:$0xf] }
 0x2e9   :  { %v999_v24 = vpop.f32.mrf.mxu1  ;;  %v1702_v46 = vor.u32 %v1809_v61, %v1699_v6 }
 0x2ea   :  { %v1078_v34 = vpop.f32.mrf.mxu2  ;;  %v1000_v55 = vadd.f32 %v999_v24, %v2512_v14 }
 0x2eb   :  { %v1079_v41 = vadd.f32 %v1078_v34, %v990_v36 }
 0x2ed   :  { %v1122_v33 = vmax.f32 %v1079_v41, 0.0 }
 0x2f1   :  { %v1001_v4 = vpop.f32.mrf.mxu1 }
 0x2f2   :  { %v1080_v0 = vpop.f32.mrf.mxu2  ;;  %v1002_v54 = vadd.f32 %v1001_v4, %v2520_v23 }
 0x2f3   :  { %v1081_v14 = vadd.f32 %v1080_v0, %v992_v60 }
 0x2f8   :  { %1361 = vmatmul.bf16.gmra.mxu3 %v1722_v30  ;;  %v1815_v30 = vld [vmem:[%s2746_s5 + $0x34] sm:$0xf] }
 0x2f9   :  { %v1004_v43 = vpop.f32.mrf.mxu1 }
 0x2fa   :  { %v1083_v21 = vpop.f32.mrf.mxu2  ;;  %v1005_v45 = vadd.f32 %v1004_v43, %v2510_v10  ;;  %v997_v10 = vadd.f32 %v996_v8, %v2522_v25  ;;  %v1123_v25 = vmax.f32 %v1081_v14, 0.0  ;;  %v1723_v8 = vld [vmem:[%s2746_s5 + $0x38] sm:$0xf0]  ;;  %v1742_v43 = vor.u32 %v1819_v12, %v1739_v63 }
 0x2fb   :  { %v1084_v11 = vadd.f32 %v1083_v21, %v995_v16  ;;  %v1726_v24 = vor.u32 %v1815_v30, %v1723_v8 }
 0x2fc   :  { %v1158_v44 = vpack.c.bf16 %v1123_v25, %v1122_v33 }
 0x2fd   :  { %v1124_v50 = vmax.f32 %v1084_v11, 0.0 }
 0x301   :  { %v1006_v47 = vpop.f32.mrf.mxu1 }
 0x302   :  { %v1085_v22 = vpop.f32.mrf.mxu2  ;;  %v1007_v48 = vadd.f32 %v1006_v47, %v2534_v5  ;;  %v2683_v47 = vpop.permute.xlu0 %1240 }
 0x303   :  { %v1086_v17 = vadd.f32 %v1085_v22, %v997_v10  ;;  %v1731_v22 = vld [vmem:[%s2746_s5 + $0x48] sm:$0xf0] }
 0x304   :  { %v1734_v4 = vor.u32 %v1817_v19, %v1731_v22 }
 0x305   :  { %v1125_v27 = vmax.f32 %v1086_v17, 0.0 }
 0x307   :  { %v1159_v32 = vpack.c.bf16 %v1125_v27, %v1124_v50 }
 0x308   :  { %1366 = vmatmul.bf16.gmra.mxu3 %v1730_v56 }
 0x30a   :  { %v1088_v31 = vpop.f32.mrf.mxu2  ;;  %v2695_v49 = vpop.permute.xlu0 %1235 }
 0x30b   :  { %v1089_v23 = vadd.f32 %v1088_v31, %v1000_v55  ;;  %v1823_v55 = vld [vmem:[%s2746_s5 + $0x74] sm:$0xf] }
 0x30d   :  { %v1126_v13 = vmax.f32 %v1089_v23, 0.0 }
 0x312   :  { %v1090_v1 = vpop.f32.mrf.mxu2  ;;  %v1211_v23 = vpop.permute.xlu0 %1210 }
 0x313   :  { %v1091_v18 = vadd.f32 %v1090_v1, %v1002_v54  ;;  %v1747_v54 = vld [vmem:[%s2746_s5 + $0x68] sm:$0xf0] }
 0x315   :  { %v1127_v38 = vmax.f32 %v1091_v18, 0.0  ;;  %v1755_v18 = vld [vmem:[%s2746_s5 + $0x78] sm:$0xf0] }
 0x316   :  { %v1758_v10 = vor.u32 %v1823_v55, %v1755_v18 }
 0x317   :  { %v1160_v39 = vpack.c.bf16 %v1127_v38, %v1126_v13 }
 0x318   :  { %1371 = vmatmul.bf16.gmra.mxu3 %v1738_v7 }
 0x31a   :  { %v1093_v42 = vpop.f32.mrf.mxu2  ;;  %v1206_v17 = vpop.permute.xlu0 %1205 }
 0x31b   :  { %v1094_v52 = vadd.f32 %v1093_v42, %v1005_v45  ;;  %v2681_v42 = vpop.permute.xlu1 %1250  ;;  %v1821_v45 = vld [vmem:[%s2746_s5 + $0x64] sm:$0xf] }
 0x31d   :  { %v1128_v59 = vmax.f32 %v1094_v52, 0.0  ;;  %v1750_v52 = vor.u32 %v1821_v45, %v1747_v54 }
 0x322   :  { %v1095_v51 = vpop.f32.mrf.mxu2  ;;  %v1181_v11 = vpop.permute.xlu0 %1180 }
 0x323   :  { %v1096_v58 = vadd.f32 %v1095_v51, %v1007_v48  ;;  %v2693_v35 = vpop.permute.xlu1 %1245 }
 0x325   :  { %v1129_v5 = vmax.f32 %v1096_v58, 0.0 }
 0x327   :  { %v1161_v9 = vpack.c.bf16 %v1129_v5, %v1128_v59  ;;  %v2707_v59 = vpop.permute.xlu2 %1255 }
 0x328   :  { %1376 = vmatmul.bf16.gmra.mxu3 %v1746_v57 }
 0x329   :  { %1387 = vmatpush.bf16.msrb.mxu3 %v1161_v9 }
 0x32b   :  { %v1221_v58 = vpop.permute.xlu1 %1220 }
 0x32d   :  { %1388 = vmatpush.bf16.msrb.mxu3 %v1160_v39 }
 0x32f   :  { %v1231_v38 = vpop.permute.xlu2 %1230 }
 0x331   :  { %1389 = vmatpush.bf16.msrb.mxu3 %v1159_v32 }
 0x333   :  { %v1216_v16 = vpop.permute.xlu1 %1215 }
 0x335   :  { %1390 = vmatpush.bf16.msrb.mxu3 %v1158_v44 }
 0x337   :  { %v1226_v39 = vpop.permute.xlu2 %1225 }
 0x338   :  { %1381 = vmatmul.bf16.gmra.mxu3 %v1754_v2 }
 0x339   :  { %1391 = vmatpush.bf16.msrb.mxu3 %v2585_v53  ;;  %v1811_v53 = vld [vmem:[%s2746_s5 + $0x14] sm:$0xf] }
 0x33b   :  { %v1191_v60 = vpop.permute.xlu1 %1190 }
 0x33d   :  { %1392 = vmatpush.bf16.msrb.mxu3 %v2575_v28 }
 0x33f   :  { %v1201_v44 = vpop.permute.xlu2 %1200 }
 0x341   :  { %1393 = vmatpush.bf16.msrb.mxu3 %v2566_v37  ;;  %v1707_v37 = vld [vmem:[%s2746_s5 + $0x18] sm:$0xf0] }
 0x342   :  { %v1710_v34 = vor.u32 %v1811_v53, %v1707_v37 }
 0x343   :  { %v1186_v50 = vpop.permute.xlu1 %1185 }
 0x345   :  { %1394 = vmatpush.bf16.msrb.mxu3 %v2554_v29  ;;  %v1715_v29 = vld [vmem:[%s2746_s5 + $0x28] sm:$0xf0] }
 0x346   :  { %v1718_v20 = vor.u32 %v1813_v15, %v1715_v29 }
 0x347   :  { %v1196_v53 = vpop.permute.xlu2 %1195 }
 0x348   :  { %1395 = vmatmul.bf16.vlgmr.msrb.gmra.mxu3 %v1702_v46 }
 0x34b   :  { %v1347_v36 = vpop.f32.mrf.mxu3 }
 0x34c   :  { %v1348_v13 = vadd.f32 %v1347_v36, %v1181_v11 }
 0x353   :  { %v1349_v28 = vpop.f32.mrf.mxu3 }
 0x354   :  { %v1350_v25 = vadd.f32 %v1349_v28, %v1186_v50 }
 0x358   :  { %1400 = vmatmul.bf16.gmra.mxu3 %v1710_v34 }
 0x35b   :  { %v1352_v41 = vpop.f32.mrf.mxu3 }
 0x35c   :  { %v1353_v61 = vadd.f32 %v1352_v41, %v1191_v60 }
 0x363   :  { %v2647_v26 = vpop.f32.mrf.mxu3 }
 0x364   :  { %v1355_v37 = vadd.f32 %v2647_v26, %v1196_v53 }
 0x368   :  { %1405 = vmatmul.bf16.gmra.mxu3 %v1718_v20 }
 0x36b   :  { %v2649_v0 = vpop.f32.mrf.mxu3 }
 0x36c   :  { %v1358_v28 = vadd.f32 %v2649_v0, %v1201_v44 }
 0x373   :  { %v2657_v21 = vpop.f32.mrf.mxu3 }
 0x378   :  { %1410 = vmatmul.bf16.gmra.mxu3 %v1726_v24  ;;  %v1360_v24 = vadd.f32 %v2657_v21, %v1206_v17 }
 0x37b   :  { %v2659_v3 = vpop.f32.mrf.mxu3 }
 0x37c   :  { %v1363_v63 = vadd.f32 %v2659_v3, %v1211_v23 }
 0x383   :  { %v2667_v56 = vpop.f32.mrf.mxu3 }
 0x384   :  { %v1365_v45 = vadd.f32 %v2667_v56, %v1216_v16 }
 0x388   :  { %1415 = vmatmul.bf16.gmra.mxu3 %v1734_v4 }
 0x38b   :  { %v2669_v31 = vpop.f32.mrf.mxu3 }
 0x393   :  { %v2677_v1 = vpop.f32.mrf.mxu3 }
 0x394   :  { %v1370_v17 = vadd.f32 %v2677_v1, %v1226_v39 }
 0x398   :  { %1420 = vmatmul.bf16.gmra.mxu3 %v1742_v43 }
 0x39b   :  { %v2679_v7 = vpop.f32.mrf.mxu3 }
 0x39c   :  { %v1373_v50 = vadd.f32 %v2679_v7, %v1231_v38 }
 0x3a3   :  { %v2691_v48 = vpop.f32.mrf.mxu3 }
 0x3a4   :  { %v1375_v56 = vadd.f32 %v2691_v48, %v2695_v49 }
 0x3a8   :  { %1425 = vmatmul.bf16.gmra.mxu3 %v1750_v52 }
 0x3ab   :  { %v2697_v51 = vpop.f32.mrf.mxu3 }
 0x3ac   :  { %v1378_v1 = vadd.f32 %v2697_v51, %v2683_v47 }
 0x3b3   :  { %v2705_v57 = vpop.f32.mrf.mxu3 }
 0x3b4   :  { %v1380_v39 = vadd.f32 %v2705_v57, %v2693_v35 }
 0x3b8   :  { %1430 = vmatmul.bf16.gmra.mxu3 %v1758_v10  ;;  %v1368_v10 = vadd.f32 %v2669_v31, %v1221_v58 }
 0x3bb   :  { %v2709_v5 = vpop.f32.mrf.mxu3 }
 0x3bc   :  { %v1383_v49 = vadd.f32 %v2709_v5, %v2681_v42  ;;  %v1452_v42 = vld [vmem:[%s2747_s7] sm:$0xf] }
 0x3c3   :  { %v2711_v9 = vpop.f32.mrf.mxu3 }
 0x3cb   :  { %v1396_v14 = vpop.f32.mrf.mxu3 }
 0x3cc   :  { %v1397_v27 = vadd.f32 %v1396_v14, %v1348_v13 }
 0x3ce   :  { %v1436_v62 = vmax.f32 %v1397_v27, 0.0 }
 0x3d3   :  { %v1398_v32 = vpop.f32.mrf.mxu3 }
 0x3d4   :  { %v1399_v33 = vadd.f32 %v1398_v32, %v1350_v25 }
 0x3d6   :  { %v1437_v40 = vmax.f32 %v1399_v33, 0.0 }
 0x3d8   :  { %v2713_v2 = vpack.c.bf16 %v1437_v40, %v1436_v62 }
 0x3db   :  { %v1401_v6 = vpop.f32.mrf.mxu3 }
 0x3dc   :  { %v1402_v46 = vadd.f32 %v1401_v6, %v1353_v61 }
 0x3de   :  { %v1438_v15 = vmax.f32 %v1402_v46, 0.0  ;;  %v1385_v46 = vadd.f32 %v2711_v9, %v2707_v59 }
 0x3e3   :  { %v1403_v34 = vpop.f32.mrf.mxu3 }
 0x3e4   :  { %v1404_v36 = vadd.f32 %v1403_v34, %v1355_v37 }
 0x3e6   :  { %v1439_v29 = vmax.f32 %v1404_v36, 0.0 }
 0x3e8   :  { %v1454_v20 = vpack.c.bf16 %v1439_v29, %v1438_v15 }
 0x3eb   :  { %v1406_v30 = vpop.f32.mrf.mxu3 }
 0x3ec   :  { %v1407_v8 = vadd.f32 %v1406_v30, %v1358_v28 }
 0x3ee   :  { %v1440_v4 = vmax.f32 %v1407_v8, 0.0 }
 0x3f3   :  { %v1408_v19 = vpop.f32.mrf.mxu3 }
 0x3f4   :  { %v1409_v22 = vadd.f32 %v1408_v19, %v1360_v24 }
 0x3f6   :  { %v1441_v41 = vmax.f32 %v1409_v22, 0.0 }
 0x3f8   :  { %v1455_v12 = vpack.c.bf16 %v1441_v41, %v1440_v4 }
 0x3fb   :  { %v1411_v43 = vpop.f32.mrf.mxu3 }
 0x3fc   :  { %v1412_v26 = vadd.f32 %v1411_v43, %v1363_v63 }
 0x3fe   :  { %v1442_v55 = vmax.f32 %v1412_v26, 0.0 }
 0x403   :  { %v1413_v54 = vpop.f32.mrf.mxu3 }
 0x404   :  { %v1414_v52 = vadd.f32 %v1413_v54, %v1365_v45 }
 0x406   :  { %v1443_v18 = vmax.f32 %v1414_v52, 0.0 }
 0x408   :  { %v1456_v0 = vpack.c.bf16 %v1443_v18, %v1442_v55 }
 0x40b   :  { %v1416_v60 = vpop.f32.mrf.mxu3 }
 0x40c   :  { %v1417_v21 = vadd.f32 %v1416_v60, %v1368_v10 }
 0x40e   :  { %v1444_v14 = vmax.f32 %v1417_v21, 0.0 }
 0x413   :  { %v1418_v11 = vpop.f32.mrf.mxu3 }
 0x414   :  { %v1419_v13 = vadd.f32 %v1418_v11, %v1370_v17 }
 0x416   :  { %v1445_v27 = vmax.f32 %v1419_v13, 0.0 }
 0x418   :  { %v1457_v3 = vpack.c.bf16 %v1445_v27, %v1444_v14 }
 0x41b   :  { %v1421_v23 = vpop.f32.mrf.mxu3 }
 0x41c   :  { %v1422_v16 = vadd.f32 %v1421_v23, %v1373_v50 }
 0x41e   :  { %v1446_v33 = vmax.f32 %v1422_v16, 0.0 }
 0x423   :  { %v1423_v25 = vpop.f32.mrf.mxu3 }
 0x424   :  { %v1424_v32 = vadd.f32 %v1423_v25, %v1375_v56 }
 0x426   :  { %v1447_v31 = vmax.f32 %v1424_v32, 0.0 }
 0x428   :  { %v1458_v58 = vpack.c.bf16 %v1447_v31, %v1446_v33 }
 0x42b   :  { %v1426_v62 = vpop.f32.mrf.mxu3 }
 0x42c   :  { %v1427_v40 = vadd.f32 %v1426_v62, %v1378_v1 }
 0x42e   :  { %v1448_v7 = vmax.f32 %v1427_v40, 0.0 }
 0x433   :  { %v1428_v44 = vpop.f32.mrf.mxu3 }
 0x434   :  { %v1429_v61 = vadd.f32 %v1428_v44, %v1380_v39 }
 0x436   :  { %v1449_v38 = vmax.f32 %v1429_v61, 0.0 }
 0x438   :  { %v1459_v6 = vpack.c.bf16 %v1449_v38, %v1448_v7 }
 0x43b   :  { %v1431_v48 = vpop.f32.mrf.mxu3 }
 0x43c   :  { %v1432_v53 = vadd.f32 %v1431_v48, %v1383_v49 }
 0x43e   :  { %v1450_v47 = vmax.f32 %v1432_v53, 0.0 }
 0x443   :  { %v1433_v37 = vpop.f32.mrf.mxu3 }
 0x444   :  { %v1434_v34 = vadd.f32 %v1433_v37, %v1385_v46 }
 0x446   :  { %v1451_v51 = vmax.f32 %v1434_v34, 0.0 }
 0x448   :  { %v1460_v36 = vpack.c.bf16 %v1451_v51, %v1450_v47 }
 0x44a   :  { %1461 = vmatpush.bf16.msrb.mxu0 %v1460_v36 }
 0x44e   :  { %1462 = vmatpush.bf16.msrb.mxu0 %v1459_v6 }
 0x452   :  { %1463 = vmatpush.bf16.msrb.mxu0 %v1458_v58 }
 0x456   :  { %1464 = vmatpush.bf16.msrb.mxu0 %v1457_v3 }
 0x45a   :  { %1465 = vmatpush.bf16.msrb.mxu0 %v1456_v0 }
 0x45e   :  { %1466 = vmatpush.bf16.msrb.mxu0 %v1455_v12 }
 0x462   :  { %1467 = vmatpush.bf16.msrb.mxu0 %v1454_v20 }
 0x466   :  { %1468 = vmatpush.bf16.msrb.mxu0 %v2713_v2 }
 0x469   :  { %1469 = vmatmul.bf16.vlgmr.msrb.gmra.mxu0 %v1452_v42 }
 0x4e6   :  { %v1470_v35 = vpop.f32.mrf.mxu0 }
 0x4e7   :  { %1474 = vst [vmem:[%s2748_s8] sm:$0x1] %v1470_v35 }
 0x4ee   :  { %v1472_v57 = vpop.f32.mrf.mxu0 }

</bundles_post_ra>
